<compile_context>
chip_gen: v7x
topology: tpu7x:2x2x1
jax: 0.10.0
libtpu: 0.0.40
codegen_flags: <defaults>
</compile_context>

<pallas_src>
import functools
import random

import jax
import jax.numpy as jnp
from jax.experimental import pallas as pl
from jax.experimental.pallas import tpu as pltpu


# ----------------------------------------------------------------------------
# small helpers
# ----------------------------------------------------------------------------
def _round_up(x, m):
    return -(-x // m) * m


def _bspec(shape, index_map, *, single_buffer=False):
    """BlockSpec; grid-invariant blocks get single buffering (no wasted 2x)."""
    if single_buffer and hasattr(pl, "Buffered"):
        try:
            return pl.BlockSpec(shape, index_map, pipeline_mode=pl.Buffered(1))
        except TypeError:          # older jax without pipeline_mode kwarg
            pass
    return pl.BlockSpec(shape, index_map)


def _full_spec(arr):
    zeros = (0,) * arr.ndim
    return _bspec(arr.shape, lambda i, _z=zeros: _z, single_buffer=True)


def _vmem_limit_bytes():
    # Generation-aware scoped-VMEM cap: ~7/8 of physical (headroom for Mosaic
    # internal scratch).  v5e/v6e (128 MiB) -> 112 MiB, v7x (64 MiB) -> 56 MiB.
    cap = 64 * 2 ** 20             # conservative fallback (v7x physical)
    try:
        info = pltpu.get_tpu_info()
        cap = int(getattr(info, "vmem_capacity_bytes", cap)) or cap
    except Exception:
        pass
    cap = min(cap, 128 * 2 ** 20)
    return max(32 * 2 ** 20, cap - cap // 8)


def _compiler_params(semantics):
    return pltpu.CompilerParams(dimension_semantics=semantics,
                                vmem_limit_bytes=_vmem_limit_bytes())


# ----------------------------------------------------------------------------
# Pallas kernels
# ----------------------------------------------------------------------------
def transformer_kernel(x_ref, mcol_ref, mrow_ref,
                       wqkv_ref, bqkv_ref, wo_ref, bo_ref,
                       w1_ref, b1_ref, w2_ref, b2_ref,
                       g1_ref, be1_ref, g2_ref, be2_ref,
                       o_ref, ctx_sc,
                       *, n_layers, n_heads, t_real, t_code, ffn_chunk):
    """One batch element: apply the (weight-shared) transformer block n_layers times."""
    f32 = jnp.float32
    bf16 = jnp.bfloat16

    x = x_ref[...]                                   # (Tp, D) f32 residual
    tp, d = x.shape
    hd = d // n_heads
    d_ff = w1_ref.shape[1]
    n_fc = d_ff // ffn_chunk

    # --- additive {0,1} attention mask rebuilt from two O(T) vectors --------
    # includes the AR in-place edits (zero block + tril) that NAR also sees.
    mc = mcol_ref[...]                               # (Tp, 1)  {0,1}
    mr = mrow_ref[...]                               # (1, Tp)  {0,1}
    ii = jax.lax.broadcasted_iota(jnp.int32, (tp, tp), 0)
    jj = jax.lax.broadcasted_iota(jnp.int32, (tp, tp), 1)
    base = mc * mr                                   # outer product
    in_code_cols = (jj >= t_real - t_code) & (jj < t_real)
    kill = in_code_cols & ((ii < t_code) |
                           ((ii >= t_real - t_code) & (jj > ii)))
    add_mask = jnp.where(kill, 0.0, base)
    add_mask = jnp.where(jj < t_real, add_mask, -1e30)   # pad keys never count
    add_mask = add_mask.astype(bf16)                 # resident at half size

    def layernorm(z, g, b):
        mu = jnp.mean(z, axis=-1, keepdims=True)
        var = jnp.mean((z - mu) ** 2, axis=-1, keepdims=True)
        return (z - mu) * jax.lax.rsqrt(var + 1e-5) * g + b

    def gelu(z):                 # exact (erf) GELU, torch.nn.GELU default
        return 0.5 * z * (1.0 + jax.lax.erf(z * 0.7071067811865476))

    def layer(_, x):
        x_bf = x.astype(bf16)
        # fused qkv projection; 1/sqrt(hd) already folded into the q columns.
        # keep the result in bf16 - it only ever feeds the MXU.
        qkv = (jnp.dot(x_bf, wqkv_ref[...], preferred_element_type=f32)
               + bqkv_ref[...]).astype(bf16)         # (Tp, 3D)
        q = qkv[:, :d]
        v = qkv[:, 2 * d:]
        kt = qkv[:, d:2 * d].T                       # (D, Tp): ONE transpose per
                                                     # layer; per-head slices of kt
                                                     # are cheap sublane slices.
        for h in range(n_heads):
            lo = h * hd
            s = jnp.dot(q[:, lo:lo + hd], kt[lo:lo + hd, :],
                        preferred_element_type=f32)  # (Tp, Tp)
            s = s + add_mask                         # float mask is ADDED
            s = s - jnp.max(s, axis=-1, keepdims=True)
            p = jnp.exp(s)
            p = p * pl.reciprocal(jnp.sum(p, axis=-1, keepdims=True),
                                  approx=True)       # EUP slot
            hv = jnp.dot(p.astype(bf16), v[:, lo:lo + hd],
                         preferred_element_type=f32) # (Tp, hd)
            ctx_sc[:, lo:lo + hd] = hv.astype(bf16)  # cheap masked vst
        # single K = D output projection: full MXU contraction fill
        attn = jnp.dot(ctx_sc[...], wo_ref[...],
                       preferred_element_type=f32) + bo_ref[...]
        x = layernorm(x + attn, g1_ref[...], be1_ref[...])

        # --- FFN chunked over the 4D hidden dim (never materializes (Tp,4D))
        x_bf2 = x.astype(bf16)

        def ffn_chunk_body(c, acc):
            c0 = pl.multiple_of(c * ffn_chunk, ffn_chunk)
            hid = gelu(jnp.dot(x_bf2, w1_ref[:, pl.ds(c0, ffn_chunk)],
                               preferred_element_type=f32)
                       + b1_ref[:, pl.ds(c0, ffn_chunk)])
            return acc + jnp.dot(hid.astype(bf16),
                                 w2_ref[pl.ds(c0, ffn_chunk), :],
                                 preferred_element_type=f32)

        ffn = jax.lax.fori_loop(0, n_fc, ffn_chunk_body, x + b2_ref[...],
                                unroll=True)         # residual + b2 folded in
        return layernorm(ffn, g2_ref[...], be2_ref[...])

    o_ref[...] = jax.lax.fori_loop(0, n_layers, layer, x)


def ce_kernel(xs_ref, w_ref, y_ref, gm_ref, o_ref,
              m_sc, l_sc, p_sc, *, ignore_ind, v_real, v_block):
    """logits = xs @ W (vocab-tiled), logits *= gt_mask, online-logsumexp CE.

    Emits one scalar per batch element (sum of per-token losses).
    """
    vb = pl.program_id(1)

    @pl.when(vb == 0)
    def _():
        m_sc[...] = jnp.full_like(m_sc, -1e30)
        l_sc[...] = jnp.zeros_like(l_sc)
        p_sc[...] = jnp.zeros_like(p_sc)

    xs = xs_ref[...]                       # (Tc, D)  bf16
    w = w_ref[...]                         # (D, VB)  bf16
    y = y_ref[...]                         # (Tc, 1)  int32
    gm = gm_ref[...]                       # (Tc, 1)  f32 (gt_mask)

    h = jnp.dot(xs, w, preferred_element_type=jnp.float32) * gm   # (Tc, VB)
    tc, vbk = h.shape
    col = jax.lax.broadcasted_iota(jnp.int32, (tc, vbk), 1) + vb * v_block
    h = jnp.where(col < v_real, h, -1e30)  # padded vocab columns never count

    m_prev = m_sc[...]
    m_new = jnp.maximum(m_prev, jnp.max(h, axis=-1, keepdims=True))
    alpha = jnp.exp(m_prev - m_new)
    l_sc[...] = alpha * l_sc[...] + jnp.sum(jnp.exp(h - m_new),
                                            axis=-1, keepdims=True)
    m_sc[...] = m_new
    onehot = (col == y).astype(jnp.float32)
    p_sc[...] = p_sc[...] + jnp.sum(h * onehot, axis=-1, keepdims=True)

    @pl.when(vb == pl.num_programs(1) - 1)
    def _():
        lse = m_sc[...] + jnp.log(l_sc[...])
        valid = (y != ignore_ind).astype(jnp.float32)
        loss = (lse - p_sc[...]) * valid                          # (Tc, 1)
        o_ref[...] = jnp.sum(loss, axis=0, keepdims=True)         # (1, 1)


# ----------------------------------------------------------------------------
# Pallas wrappers
# ----------------------------------------------------------------------------
def run_transformer(x, mask1d, p, n_layers, n_heads, t_code):
    b, t_real, d = x.shape
    hd = d // n_heads

    t_pad = _round_up(t_real, 16)          # bf16-friendly sublane multiple
    pad = t_pad - t_real
    x_p = jnp.pad(x, ((0, 0), (0, pad), (0, 0)))
    m1 = jnp.pad(mask1d.astype(jnp.float32), ((0, 0), (0, pad)))
    m_col = m1[:, :, None]                 # (b, Tp, 1)
    m_row = m1[:, None, :]                 # (b, 1, Tp)

    bf = jnp.bfloat16
    scale = 1.0 / (hd ** 0.5)
    # one-time static weight transform: fold the attention score scale into
    # the q slice of the fused qkv projection (weights AND bias).
    wqkv = jnp.concatenate([p['wqkv'][:, :d] * scale, p['wqkv'][:, d:]], axis=1)
    bqkv = jnp.concatenate([p['bqkv'][:, :d] * scale, p['bqkv'][:, d:]], axis=1)

    d_ff = p['w1'].shape[1]
    ffn_chunk = d_ff
    for cand in (512, 256, 128):
        if d_ff % cand == 0:
            ffn_chunk = cand
            break

    weights = [
        wqkv.astype(bf), bqkv,
        p['wo'].astype(bf), p['bo'],
        p['w1'].astype(bf), p['b1'],
        p['w2'].astype(bf), p['b2'],
        p['g1'], p['be1'], p['g2'], p['be2'],
    ]

    kern = functools.partial(transformer_kernel, n_layers=n_layers,
                             n_heads=n_heads, t_real=t_real, t_code=t_code,
                             ffn_chunk=ffn_chunk)
    out = pl.pallas_call(
        kern,
        out_shape=jax.ShapeDtypeStruct((b, t_pad, d), jnp.float32),
        grid=(b,),
        in_specs=[_bspec((None, t_pad, d), lambda i: (i, 0, 0)),
                  _bspec((None, t_pad, 1), lambda i: (i, 0, 0)),
                  _bspec((None, 1, t_pad), lambda i: (i, 0, 0))]
                 + [_full_spec(w) for w in weights],
        out_specs=pl.BlockSpec((None, t_pad, d), lambda i: (i, 0, 0)),
        scratch_shapes=[pltpu.VMEM((t_pad, d), jnp.bfloat16)],   # ctx scratch
        compiler_params=_compiler_params(("parallel",)),
    )(x_p, m_col, m_row, *weights)
    return out[:, :t_real, :]


def run_masked_cross_entropy(xs, emb_w, y, gt_mask, ignore_ind=-1):
    """logits = xs @ emb_w.T ; logits *= gt_mask ; CE(mean over non-ignored)."""
    b, tc, d = xs.shape
    v = emb_w.shape[0]

    tc_pad = _round_up(tc, 16)
    pad_t = tc_pad - tc
    xs_p = jnp.pad(xs, ((0, 0), (0, pad_t), (0, 0))).astype(jnp.bfloat16)
    y_p = jnp.pad(y.astype(jnp.int32), ((0, 0), (0, pad_t)),
                  constant_values=ignore_ind)[..., None]
    gm_p = jnp.pad(gt_mask.astype(jnp.float32), ((0, 0), (0, pad_t)))[..., None]

    v_block = min(4096, _round_up(v, 128))           # lane-aligned vocab tile
    v_pad = _round_up(v, v_block)
    n_vb = v_pad // v_block
    w_t = jnp.zeros((d, v_pad), jnp.bfloat16).at[:, :v].set(
        emb_w.T.astype(jnp.bfloat16))                # pre-transposed (D, Vp)

    kern = functools.partial(ce_kernel, ignore_ind=ignore_ind, v_real=v,
                             v_block=v_block)
    per_batch = pl.pallas_call(
        kern,
        out_shape=jax.ShapeDtypeStruct((b, 1, 1), jnp.float32),
        grid=(b, n_vb),
        in_specs=[_bspec((None, tc_pad, d), lambda i, j: (i, 0, 0),
                         single_buffer=True),
                  _bspec((d, v_block), lambda i, j: (0, j)),
                  _bspec((None, tc_pad, 1), lambda i, j: (i, 0, 0),
                         single_buffer=True),
                  _bspec((None, tc_pad, 1), lambda i, j: (i, 0, 0),
                         single_buffer=True)],
        out_specs=pl.BlockSpec((None, 1, 1), lambda i, j: (i, 0, 0)),
        scratch_shapes=[pltpu.VMEM((tc_pad, 1), jnp.float32),
                        pltpu.VMEM((tc_pad, 1), jnp.float32),
                        pltpu.VMEM((tc_pad, 1), jnp.float32)],
        compiler_params=_compiler_params(("parallel", "arbitrary")),
    )(xs_p, w_t, y_p, gm_p)
    return jnp.sum(per_batch) / jnp.sum(gt_mask.astype(jnp.float32))


# ----------------------------------------------------------------------------
# Model glue (embeddings, masks, AR/NAR assembly) — plain JAX
# ----------------------------------------------------------------------------
def make_sin_emb(d_model, max_len=64):
    theta = (jnp.arange(max_len // 2, dtype=jnp.float32)[:, None]
             / jnp.power(10000.0,
                         jnp.arange(0, d_model * 2, 2, dtype=jnp.float32)
                         / d_model))
    emb = jnp.concatenate((jnp.sin(theta), jnp.cos(theta)),
                          axis=1).reshape(max_len, d_model)
    return emb.astype(jnp.float32)


def init_params(key, n_vocab, n_codec, d_model):
    V = n_vocab + 2
    keys = list(jax.random.split(key, 32))
    kit = iter(keys)

    def nrm(shape, scale=0.02):
        return (scale * jax.random.normal(next(kit), shape)).astype(jnp.float32)

    def tr_params(d):
        # weights kept pre-transposed ("x @ W" layout) for the MXU
        return dict(
            wqkv=nrm((d, 3 * d)), bqkv=jnp.zeros((1, 3 * d), jnp.float32),
            wo=nrm((d, d)), bo=jnp.zeros((1, d), jnp.float32),
            w1=nrm((d, 4 * d)), b1=jnp.zeros((1, 4 * d), jnp.float32),
            w2=nrm((4 * d, d)), b2=jnp.zeros((1, d), jnp.float32),
            g1=jnp.ones((1, d), jnp.float32), be1=jnp.zeros((1, d), jnp.float32),
            g2=jnp.ones((1, d), jnp.float32), be2=jnp.zeros((1, d), jnp.float32),
        )

    return dict(
        text_emb=nrm((V, d_model)),
        wave_emb=[nrm((V, d_model)) for _ in range(n_codec)],
        pos_emb=make_sin_emb(d_model),
        ar=tr_params(d_model),
        nar=tr_params(d_model),
    )


def emb_forward(text, prom, code, params, n_codec, start_ind, end_ind):
    # train-mode branch of Emb.forward; returns the 1-D token mask (the dense
    # T x T additive mask, incl. the AR edits, is rebuilt inside the kernel).
    text = jnp.where(text == -1, end_ind, text)
    prom = jnp.where(prom == -1, end_ind, prom)
    code = jnp.where(code == -1, end_ind, code)
    text = jnp.pad(text, ((0, 0), (1, 0)), constant_values=start_ind)
    code = jnp.pad(code, ((0, 0), (1, 0), (0, 0)), constant_values=start_ind)
    text = jnp.pad(text, ((0, 0), (0, 1)), constant_values=end_ind)
    code = jnp.pad(code, ((0, 0), (0, 1), (0, 0)), constant_values=end_ind)
    gt = code

    text_mask = jnp.pad((text != end_ind)[:, :-1], ((0, 0), (1, 0)),
                        constant_values=True)
    prom_mask = jnp.pad((prom != end_ind)[:, :-1, 0], ((0, 0), (1, 0)),
                        constant_values=True)
    code_mask = jnp.pad((code != end_ind)[:, :-1, 0], ((0, 0), (1, 0)),
                        constant_values=True)
    mask1d = jnp.concatenate((text_mask, prom_mask, code_mask),
                             axis=1).astype(jnp.float32)
    gt_mask = code_mask

    pos = params['pos_emb']
    text_e = params['text_emb'][text] + pos[None, :text.shape[1], :]
    prom_e = jnp.stack([params['wave_emb'][i][prom[..., i]]
                        for i in range(n_codec)], axis=-1)
    code_e = jnp.stack([params['wave_emb'][i][code[..., i]]
                        for i in range(n_codec)], axis=-1)
    prom_e = prom_e + pos[None, :prom_e.shape[1], :, None]
    code_e = code_e + pos[None, :code_e.shape[1], :, None]
    return text_e, prom_e, code_e, mask1d, gt, gt_mask


def ar_forward(text_e, prom_e0, code_e0, mask1d, gt0, gt_mask, params,
               wave_emb0, n_layers, n_heads, ignore_ind):
    x = jnp.concatenate((text_e, prom_e0, code_e0), axis=1)   # (b, T, d)
    Tc = code_e0.shape[1]
    # the in-place AR mask edits (zero block + tril) are applied in-kernel via
    # t_code; the original edits the shared mask so NAR sees the same edits.
    x = run_transformer(x, mask1d, params, n_layers, n_heads, t_code=Tc)
    xs = x[:, -gt0.shape[1] - 1:-1, :]
    y = jnp.where(gt_mask, gt0, ignore_ind)
    return run_masked_cross_entropy(xs, wave_emb0, y, gt_mask, ignore_ind)


def nar_forward(text_e, prom_e, code_e, mask1d, gt, gt_mask, params,
                wave_embs, level_i, n_layers, n_heads, ignore_ind):
    prom_s = jnp.sum(prom_e, axis=-1)
    code_s = jnp.sum(code_e[..., :level_i], axis=-1)
    x = jnp.concatenate((text_e, prom_s, code_s), axis=1)
    Tc = gt.shape[1]
    x = run_transformer(x, mask1d, params, n_layers, n_heads, t_code=Tc)
    xs = x[:, -Tc:, :]
    y = jnp.where(gt_mask, gt[..., level_i], ignore_ind)
    return run_masked_cross_entropy(xs, wave_embs[level_i], y, gt_mask,
                                    ignore_ind)


def valle_forward(text, prom, code, params, *, n_codec, d_model,
                  n_heads, n_layers):
    # training path (infer=False) of VallE.forward
    start_ind = d_model
    end_ind = d_model + 1
    ignore_ind = -1
    text_e, prom_e, code_e, mask1d, gt, gt_mask = emb_forward(
        text, prom, code, params, n_codec, start_ind, end_ind)

    l_ar = ar_forward(text_e, prom_e[..., 0], code_e[..., 0], mask1d,
                      gt[..., 0], gt_mask, params['ar'],
                      params['wave_emb'][0], n_layers, n_heads, ignore_ind)

    # NAR picks a random codec level in [1, n_codec); seeded for determinism.
    random.seed(0)
    level_i = random.randrange(1, n_codec)
    l_nar = nar_forward(text_e, prom_e, code_e, mask1d, gt, gt_mask,
                        params['nar'], params['wave_emb'], level_i,
                        n_layers, n_heads, ignore_ind)
    return [l_ar, l_nar]
    # TODO(synk): inference branch (autoregressive Categorical sampling loop)
    # has data-dependent shapes/control flow and is not implemented.


# ----------------------------------------------------------------------------
if __name__ == "__main__":
    n_vocab, n_codec = 40, 4
    d_model, n_heads, n_layers = 32, 4, 2
    b, t, tp, tc = 2, 6, 6, 6

    key = jax.random.PRNGKey(0)
    kp, k1, k2, k3 = jax.random.split(key, 4)
    params = init_params(kp, n_vocab, n_codec, d_model)

    text = jax.random.randint(k1, (b, t), 0, 30, dtype=jnp.int32)
    prom = jax.random.randint(k2, (b, tp, n_codec), 0, 30, dtype=jnp.int32)
    code = jax.random.randint(k3, (b, tc, n_codec), 0, 30, dtype=jnp.int32)
    # some -1 padding tokens (mapped to end_ind inside Emb)
    text = text.at[1, -1].set(-1)
    prom = prom.at[1, -1, :].set(-1)
    code = code.at[1, -1, :].set(-1)

    losses = valle_forward(text, prom, code, params,
                           n_codec=n_codec, d_model=d_model,
                           n_heads=n_heads, n_layers=n_layers)
    jax.block_until_ready(losses)
    print("KERNEL_OK")
</pallas_src>

<mosaic_0001>
module attributes {stable_mosaic.version = 11 : i64} {
  func.func @transformer_kernel(%arg0: i32, %arg1: memref<1x32x32xf32, #tpu.memory_space<vmem>>, %arg2: memref<1x32x1xf32, #tpu.memory_space<vmem>>, %arg3: memref<1x1x32xf32, #tpu.memory_space<vmem>>, %arg4: memref<32x96xbf16, #tpu.memory_space<vmem>>, %arg5: memref<1x96xf32, #tpu.memory_space<vmem>>, %arg6: memref<32x32xbf16, #tpu.memory_space<vmem>>, %arg7: memref<1x32xf32, #tpu.memory_space<vmem>>, %arg8: memref<32x128xbf16, #tpu.memory_space<vmem>>, %arg9: memref<1x128xf32, #tpu.memory_space<vmem>>, %arg10: memref<128x32xbf16, #tpu.memory_space<vmem>>, %arg11: memref<1x32xf32, #tpu.memory_space<vmem>>, %arg12: memref<1x32xf32, #tpu.memory_space<vmem>>, %arg13: memref<1x32xf32, #tpu.memory_space<vmem>>, %arg14: memref<1x32xf32, #tpu.memory_space<vmem>>, %arg15: memref<1x32xf32, #tpu.memory_space<vmem>>, %arg16: memref<1x32x32xf32, #tpu.memory_space<vmem>>, %arg17: memref<32x32xbf16, #tpu.memory_space<vmem>>) attributes {dimension_semantics = [#tpu.dimension_semantics<parallel>], iteration_bounds = array<i64: 2>, scalar_prefetch = 0 : i64, scratch_operands = 1 : i64, tpu.core_type = #tpu.core_type<tc>, window_params = [{transform_indices = @transform_0, window_bounds = array<i64: 1, 32, 32>}, {transform_indices = @transform_1, window_bounds = array<i64: 1, 32, 1>}, {transform_indices = @transform_2, window_bounds = array<i64: 1, 1, 32>}, {pipeline_mode = #tpu.pipeline_mode<synchronous>, transform_indices = @transform_3, window_bounds = array<i64: 32, 96>}, {pipeline_mode = #tpu.pipeline_mode<synchronous>, transform_indices = @transform_4, window_bounds = array<i64: 1, 96>}, {pipeline_mode = #tpu.pipeline_mode<synchronous>, transform_indices = @transform_5, window_bounds = array<i64: 32, 32>}, {pipeline_mode = #tpu.pipeline_mode<synchronous>, transform_indices = @transform_6, window_bounds = array<i64: 1, 32>}, {pipeline_mode = #tpu.pipeline_mode<synchronous>, transform_indices = @transform_7, window_bounds = array<i64: 32, 128>}, {pipeline_mode = #tpu.pipeline_mode<synchronous>, transform_indices = @transform_8, window_bounds = array<i64: 1, 128>}, {pipeline_mode = #tpu.pipeline_mode<synchronous>, transform_indices = @transform_9, window_bounds = array<i64: 128, 32>}, {pipeline_mode = #tpu.pipeline_mode<synchronous>, transform_indices = @transform_10, window_bounds = array<i64: 1, 32>}, {pipeline_mode = #tpu.pipeline_mode<synchronous>, transform_indices = @transform_11, window_bounds = array<i64: 1, 32>}, {pipeline_mode = #tpu.pipeline_mode<synchronous>, transform_indices = @transform_12, window_bounds = array<i64: 1, 32>}, {pipeline_mode = #tpu.pipeline_mode<synchronous>, transform_indices = @transform_13, window_bounds = array<i64: 1, 32>}, {pipeline_mode = #tpu.pipeline_mode<synchronous>, transform_indices = @transform_14, window_bounds = array<i64: 1, 32>}, {transform_indices = @transform_15, window_bounds = array<i64: 1, 32, 32>}]} {
    %c0 = arith.constant 0 : index
    %c0_0 = arith.constant 0 : index
    %c0_1 = arith.constant 0 : index
    %0 = vector.load %arg1[%c0, %c0_0, %c0_1] : memref<1x32x32xf32, #tpu.memory_space<vmem>>, vector<1x32x32xf32>
    %1 = vector.shape_cast %0 : vector<1x32x32xf32> to vector<32x32xf32>
    %c0_2 = arith.constant 0 : index
    %c0_3 = arith.constant 0 : index
    %c0_4 = arith.constant 0 : index
    %2 = vector.load %arg2[%c0_2, %c0_3, %c0_4] : memref<1x32x1xf32, #tpu.memory_space<vmem>>, vector<1x32x1xf32>
    %3 = vector.shape_cast %2 : vector<1x32x1xf32> to vector<32x1xf32>
    %c0_5 = arith.constant 0 : index
    %c0_6 = arith.constant 0 : index
    %c0_7 = arith.constant 0 : index
    %4 = vector.load %arg3[%c0_5, %c0_6, %c0_7] : memref<1x1x32xf32, #tpu.memory_space<vmem>>, vector<1x1x32xf32>
    %5 = vector.shape_cast %4 : vector<1x1x32xf32> to vector<1x32xf32>
    %6 = tpu.iota {dimensions = array<i32: 0>} : vector<32x32xi32>
    %7 = tpu.iota {dimensions = array<i32: 1>} : vector<32x32xi32>
    %8 = vector.broadcast %3 : vector<32x1xf32> to vector<32x32xf32>
    %9 = vector.broadcast %5 : vector<1x32xf32> to vector<32x32xf32>
    %10 = arith.mulf %8, %9 : vector<32x32xf32>
    %c14_i32 = arith.constant 14 : i32
    %11 = vector.broadcast %c14_i32 : i32 to vector<32x32xi32>
    %12 = arith.cmpi sge, %7, %11 : vector<32x32xi32>
    %c22_i32 = arith.constant 22 : i32
    %13 = vector.broadcast %c22_i32 : i32 to vector<32x32xi32>
    %14 = arith.cmpi slt, %7, %13 : vector<32x32xi32>
    %15 = arith.andi %12, %14 : vector<32x32xi1>
    %c8_i32 = arith.constant 8 : i32
    %16 = vector.broadcast %c8_i32 : i32 to vector<32x32xi32>
    %17 = arith.cmpi slt, %6, %16 : vector<32x32xi32>
    %c14_i32_8 = arith.constant 14 : i32
    %18 = vector.broadcast %c14_i32_8 : i32 to vector<32x32xi32>
    %19 = arith.cmpi sge, %6, %18 : vector<32x32xi32>
    %20 = arith.cmpi sgt, %7, %6 : vector<32x32xi32>
    %21 = arith.andi %19, %20 : vector<32x32xi1>
    %22 = arith.ori %17, %21 : vector<32x32xi1>
    %23 = arith.andi %15, %22 : vector<32x32xi1>
    %cst = arith.constant 0.000000e+00 : f32
    %24 = vector.broadcast %cst : f32 to vector<32x32xf32>
    %25 = arith.select %23, %24, %10 : vector<32x32xi1>, vector<32x32xf32>
    %c22_i32_9 = arith.constant 22 : i32
    %26 = vector.broadcast %c22_i32_9 : i32 to vector<32x32xi32>
    %27 = arith.cmpi slt, %7, %26 : vector<32x32xi32>
    %cst_10 = arith.constant -1.000000e+30 : f32
    %28 = vector.broadcast %cst_10 : f32 to vector<32x32xf32>
    %29 = arith.select %27, %25, %28 : vector<32x32xi1>, vector<32x32xf32>
    %30 = arith.truncf %29 : vector<32x32xf32> to vector<32x32xbf16>
    %c0_i32 = arith.constant 0 : i32
    %c2_i32 = arith.constant 2 : i32
    %31 = arith.addi %c0_i32, %c2_i32 : i32
    %c1_i32 = arith.constant 1 : i32
    %32 = scf.for %arg18 = %c0_i32 to %31 step %c1_i32 iter_args(%arg19 = %1) -> (vector<32x32xf32>)  : i32 {
      %36 = arith.truncf %arg19 : vector<32x32xf32> to vector<32x32xbf16>
      %c0_14 = arith.constant 0 : index
      %c0_15 = arith.constant 0 : index
      %37 = vector.load %arg4[%c0_14, %c0_15] : memref<32x96xbf16, #tpu.memory_space<vmem>>, vector<32x96xbf16>
      %cst_16 = arith.constant dense<0.000000e+00> : vector<32x96xf32>
      %38 = tpu.matmul %36, %37, %cst_16 {dimension_numbers = #tpu.dot_dimension_numbers<[1], [0], [0], [1], [0, 0, 1, 1], [], []>} : vector<32x32xbf16>, vector<32x96xbf16>, vector<32x96xf32> -> vector<32x96xf32>
      %c0_17 = arith.constant 0 : index
      %c0_18 = arith.constant 0 : index
      %39 = vector.load %arg5[%c0_17, %c0_18] : memref<1x96xf32, #tpu.memory_space<vmem>>, vector<1x96xf32>
      %40 = vector.broadcast %39 : vector<1x96xf32> to vector<32x96xf32>
      %41 = arith.addf %38, %40 : vector<32x96xf32>
      %42 = arith.truncf %41 : vector<32x96xf32> to vector<32x96xbf16>
      %43 = vector.extract_strided_slice %42 {offsets = [0, 0], sizes = [32, 32], strides = [1, 1]} : vector<32x96xbf16> to vector<32x32xbf16>
      %44 = vector.extract_strided_slice %42 {offsets = [0, 64], sizes = [32, 32], strides = [1, 1]} : vector<32x96xbf16> to vector<32x32xbf16>
      %45 = vector.extract_strided_slice %42 {offsets = [0, 32], sizes = [32, 32], strides = [1, 1]} : vector<32x96xbf16> to vector<32x32xbf16>
      %46 = tpu.transpose %45, [1, 0] : vector<32x32xbf16> -> vector<32x32xbf16>
      %47 = vector.extract_strided_slice %43 {offsets = [0, 0], sizes = [32, 8], strides = [1, 1]} : vector<32x32xbf16> to vector<32x8xbf16>
      %48 = vector.extract_strided_slice %46 {offsets = [0, 0], sizes = [8, 32], strides = [1, 1]} : vector<32x32xbf16> to vector<8x32xbf16>
      %cst_19 = arith.constant dense<0.000000e+00> : vector<32x32xf32>
      %49 = tpu.matmul %47, %48, %cst_19 {dimension_numbers = #tpu.dot_dimension_numbers<[1], [0], [0], [1], [0, 0, 1, 1], [], []>} : vector<32x8xbf16>, vector<8x32xbf16>, vector<32x32xf32> -> vector<32x32xf32>
      %50 = arith.extf %30 : vector<32x32xbf16> to vector<32x32xf32>
      %51 = arith.addf %49, %50 : vector<32x32xf32>
      %cst_20 = arith.constant dense<0xFF800000> : vector<32xf32>
      %52 = vector.multi_reduction <maximumf>, %51, %cst_20 [1] : vector<32x32xf32> to vector<32xf32>
      %53 = vector.shape_cast %52 : vector<32xf32> to vector<32x1xf32>
      %54 = vector.broadcast %53 : vector<32x1xf32> to vector<32x32xf32>
      %55 = arith.subf %51, %54 : vector<32x32xf32>
      %56 = math.exp %55 : vector<32x32xf32>
      %cst_21 = arith.constant dense<0.000000e+00> : vector<32xf32>
      %57 = vector.multi_reduction <add>, %56, %cst_21 [1] : vector<32x32xf32> to vector<32xf32>
      %58 = vector.shape_cast %57 : vector<32xf32> to vector<32x1xf32>
      %59 = tpu.reciprocal %58 {approx = true} : vector<32x1xf32> -> vector<32x1xf32>
      %60 = vector.broadcast %59 : vector<32x1xf32> to vector<32x32xf32>
      %61 = arith.mulf %56, %60 : vector<32x32xf32>
      %62 = arith.truncf %61 : vector<32x32xf32> to vector<32x32xbf16>
      %63 = vector.extract_strided_slice %44 {offsets = [0, 0], sizes = [32, 8], strides = [1, 1]} : vector<32x32xbf16> to vector<32x8xbf16>
      %cst_22 = arith.constant dense<0.000000e+00> : vector<32x8xf32>
      %64 = tpu.matmul %62, %63, %cst_22 {dimension_numbers = #tpu.dot_dimension_numbers<[1], [0], [0], [1], [0, 0, 1, 1], [], []>} : vector<32x32xbf16>, vector<32x8xbf16>, vector<32x8xf32> -> vector<32x8xf32>
      %65 = arith.truncf %64 : vector<32x8xf32> to vector<32x8xbf16>
      %c0_23 = arith.constant 0 : index
      %c0_24 = arith.constant 0 : index
      %66 = vector.load %arg17[%c0_23, %c0_24] : memref<32x32xbf16, #tpu.memory_space<vmem>>, vector<32x8xbf16>
      tpu.vector_store %arg17[%c0_23, %c0_24], %65 {strides = array<i32>} : memref<32x32xbf16, #tpu.memory_space<vmem>>, vector<32x8xbf16>,
      %67 = vector.extract_strided_slice %43 {offsets = [0, 8], sizes = [32, 8], strides = [1, 1]} : vector<32x32xbf16> to vector<32x8xbf16>
      %68 = vector.extract_strided_slice %46 {offsets = [8, 0], sizes = [8, 32], strides = [1, 1]} : vector<32x32xbf16> to vector<8x32xbf16>
      %cst_25 = arith.constant dense<0.000000e+00> : vector<32x32xf32>
      %69 = tpu.matmul %67, %68, %cst_25 {dimension_numbers = #tpu.dot_dimension_numbers<[1], [0], [0], [1], [0, 0, 1, 1], [], []>} : vector<32x8xbf16>, vector<8x32xbf16>, vector<32x32xf32> -> vector<32x32xf32>
      %70 = arith.extf %30 : vector<32x32xbf16> to vector<32x32xf32>
      %71 = arith.addf %69, %70 : vector<32x32xf32>
      %cst_26 = arith.constant dense<0xFF800000> : vector<32xf32>
      %72 = vector.multi_reduction <maximumf>, %71, %cst_26 [1] : vector<32x32xf32> to vector<32xf32>
      %73 = vector.shape_cast %72 : vector<32xf32> to vector<32x1xf32>
      %74 = vector.broadcast %73 : vector<32x1xf32> to vector<32x32xf32>
      %75 = arith.subf %71, %74 : vector<32x32xf32>
      %76 = math.exp %75 : vector<32x32xf32>
      %cst_27 = arith.constant dense<0.000000e+00> : vector<32xf32>
      %77 = vector.multi_reduction <add>, %76, %cst_27 [1] : vector<32x32xf32> to vector<32xf32>
      %78 = vector.shape_cast %77 : vector<32xf32> to vector<32x1xf32>
      %79 = tpu.reciprocal %78 {approx = true} : vector<32x1xf32> -> vector<32x1xf32>
      %80 = vector.broadcast %79 : vector<32x1xf32> to vector<32x32xf32>
      %81 = arith.mulf %76, %80 : vector<32x32xf32>
      %82 = arith.truncf %81 : vector<32x32xf32> to vector<32x32xbf16>
      %83 = vector.extract_strided_slice %44 {offsets = [0, 8], sizes = [32, 8], strides = [1, 1]} : vector<32x32xbf16> to vector<32x8xbf16>
      %cst_28 = arith.constant dense<0.000000e+00> : vector<32x8xf32>
      %84 = tpu.matmul %82, %83, %cst_28 {dimension_numbers = #tpu.dot_dimension_numbers<[1], [0], [0], [1], [0, 0, 1, 1], [], []>} : vector<32x32xbf16>, vector<32x8xbf16>, vector<32x8xf32> -> vector<32x8xf32>
      %85 = arith.truncf %84 : vector<32x8xf32> to vector<32x8xbf16>
      %c0_29 = arith.constant 0 : index
      %c8 = arith.constant 8 : index
      %86 = vector.load %arg17[%c0_29, %c8] : memref<32x32xbf16, #tpu.memory_space<vmem>>, vector<32x8xbf16>
      tpu.vector_store %arg17[%c0_29, %c8], %85 {strides = array<i32>} : memref<32x32xbf16, #tpu.memory_space<vmem>>, vector<32x8xbf16>,
      %87 = vector.extract_strided_slice %43 {offsets = [0, 16], sizes = [32, 8], strides = [1, 1]} : vector<32x32xbf16> to vector<32x8xbf16>
      %88 = vector.extract_strided_slice %46 {offsets = [16, 0], sizes = [8, 32], strides = [1, 1]} : vector<32x32xbf16> to vector<8x32xbf16>
      %cst_30 = arith.constant dense<0.000000e+00> : vector<32x32xf32>
      %89 = tpu.matmul %87, %88, %cst_30 {dimension_numbers = #tpu.dot_dimension_numbers<[1], [0], [0], [1], [0, 0, 1, 1], [], []>} : vector<32x8xbf16>, vector<8x32xbf16>, vector<32x32xf32> -> vector<32x32xf32>
      %90 = arith.extf %30 : vector<32x32xbf16> to vector<32x32xf32>
      %91 = arith.addf %89, %90 : vector<32x32xf32>
      %cst_31 = arith.constant dense<0xFF800000> : vector<32xf32>
      %92 = vector.multi_reduction <maximumf>, %91, %cst_31 [1] : vector<32x32xf32> to vector<32xf32>
      %93 = vector.shape_cast %92 : vector<32xf32> to vector<32x1xf32>
      %94 = vector.broadcast %93 : vector<32x1xf32> to vector<32x32xf32>
      %95 = arith.subf %91, %94 : vector<32x32xf32>
      %96 = math.exp %95 : vector<32x32xf32>
      %cst_32 = arith.constant dense<0.000000e+00> : vector<32xf32>
      %97 = vector.multi_reduction <add>, %96, %cst_32 [1] : vector<32x32xf32> to vector<32xf32>
      %98 = vector.shape_cast %97 : vector<32xf32> to vector<32x1xf32>
      %99 = tpu.reciprocal %98 {approx = true} : vector<32x1xf32> -> vector<32x1xf32>
      %100 = vector.broadcast %99 : vector<32x1xf32> to vector<32x32xf32>
      %101 = arith.mulf %96, %100 : vector<32x32xf32>
      %102 = arith.truncf %101 : vector<32x32xf32> to vector<32x32xbf16>
      %103 = vector.extract_strided_slice %44 {offsets = [0, 16], sizes = [32, 8], strides = [1, 1]} : vector<32x32xbf16> to vector<32x8xbf16>
      %cst_33 = arith.constant dense<0.000000e+00> : vector<32x8xf32>
      %104 = tpu.matmul %102, %103, %cst_33 {dimension_numbers = #tpu.dot_dimension_numbers<[1], [0], [0], [1], [0, 0, 1, 1], [], []>} : vector<32x32xbf16>, vector<32x8xbf16>, vector<32x8xf32> -> vector<32x8xf32>
      %105 = arith.truncf %104 : vector<32x8xf32> to vector<32x8xbf16>
      %c0_34 = arith.constant 0 : index
      %c16 = arith.constant 16 : index
      %106 = vector.load %arg17[%c0_34, %c16] : memref<32x32xbf16, #tpu.memory_space<vmem>>, vector<32x8xbf16>
      tpu.vector_store %arg17[%c0_34, %c16], %105 {strides = array<i32>} : memref<32x32xbf16, #tpu.memory_space<vmem>>, vector<32x8xbf16>,
      %107 = vector.extract_strided_slice %43 {offsets = [0, 24], sizes = [32, 8], strides = [1, 1]} : vector<32x32xbf16> to vector<32x8xbf16>
      %108 = vector.extract_strided_slice %46 {offsets = [24, 0], sizes = [8, 32], strides = [1, 1]} : vector<32x32xbf16> to vector<8x32xbf16>
      %cst_35 = arith.constant dense<0.000000e+00> : vector<32x32xf32>
      %109 = tpu.matmul %107, %108, %cst_35 {dimension_numbers = #tpu.dot_dimension_numbers<[1], [0], [0], [1], [0, 0, 1, 1], [], []>} : vector<32x8xbf16>, vector<8x32xbf16>, vector<32x32xf32> -> vector<32x32xf32>
      %110 = arith.extf %30 : vector<32x32xbf16> to vector<32x32xf32>
      %111 = arith.addf %109, %110 : vector<32x32xf32>
      %cst_36 = arith.constant dense<0xFF800000> : vector<32xf32>
      %112 = vector.multi_reduction <maximumf>, %111, %cst_36 [1] : vector<32x32xf32> to vector<32xf32>
      %113 = vector.shape_cast %112 : vector<32xf32> to vector<32x1xf32>
      %114 = vector.broadcast %113 : vector<32x1xf32> to vector<32x32xf32>
      %115 = arith.subf %111, %114 : vector<32x32xf32>
      %116 = math.exp %115 : vector<32x32xf32>
      %cst_37 = arith.constant dense<0.000000e+00> : vector<32xf32>
      %117 = vector.multi_reduction <add>, %116, %cst_37 [1] : vector<32x32xf32> to vector<32xf32>
      %118 = vector.shape_cast %117 : vector<32xf32> to vector<32x1xf32>
      %119 = tpu.reciprocal %118 {approx = true} : vector<32x1xf32> -> vector<32x1xf32>
      %120 = vector.broadcast %119 : vector<32x1xf32> to vector<32x32xf32>
      %121 = arith.mulf %116, %120 : vector<32x32xf32>
      %122 = arith.truncf %121 : vector<32x32xf32> to vector<32x32xbf16>
      %123 = vector.extract_strided_slice %44 {offsets = [0, 24], sizes = [32, 8], strides = [1, 1]} : vector<32x32xbf16> to vector<32x8xbf16>
      %cst_38 = arith.constant dense<0.000000e+00> : vector<32x8xf32>
      %124 = tpu.matmul %122, %123, %cst_38 {dimension_numbers = #tpu.dot_dimension_numbers<[1], [0], [0], [1], [0, 0, 1, 1], [], []>} : vector<32x32xbf16>, vector<32x8xbf16>, vector<32x8xf32> -> vector<32x8xf32>
      %125 = arith.truncf %124 : vector<32x8xf32> to vector<32x8xbf16>
      %c0_39 = arith.constant 0 : index
      %c24 = arith.constant 24 : index
      %126 = vector.load %arg17[%c0_39, %c24] : memref<32x32xbf16, #tpu.memory_space<vmem>>, vector<32x8xbf16>
      tpu.vector_store %arg17[%c0_39, %c24], %125 {strides = array<i32>} : memref<32x32xbf16, #tpu.memory_space<vmem>>, vector<32x8xbf16>,
      %c0_40 = arith.constant 0 : index
      %c0_41 = arith.constant 0 : index
      %127 = vector.load %arg17[%c0_40, %c0_41] : memref<32x32xbf16, #tpu.memory_space<vmem>>, vector<32x32xbf16>
      %c0_42 = arith.constant 0 : index
      %c0_43 = arith.constant 0 : index
      %128 = vector.load %arg6[%c0_42, %c0_43] : memref<32x32xbf16, #tpu.memory_space<vmem>>, vector<32x32xbf16>
      %cst_44 = arith.constant dense<0.000000e+00> : vector<32x32xf32>
      %129 = tpu.matmul %127, %128, %cst_44 {dimension_numbers = #tpu.dot_dimension_numbers<[1], [0], [0], [1], [0, 0, 1, 1], [], []>} : vector<32x32xbf16>, vector<32x32xbf16>, vector<32x32xf32> -> vector<32x32xf32>
      %c0_45 = arith.constant 0 : index
      %c0_46 = arith.constant 0 : index
      %130 = vector.load %arg7[%c0_45, %c0_46] : memref<1x32xf32, #tpu.memory_space<vmem>>, vector<1x32xf32>
      %131 = vector.broadcast %130 : vector<1x32xf32> to vector<32x32xf32>
      %132 = arith.addf %129, %131 : vector<32x32xf32>
      %133 = arith.addf %arg19, %132 : vector<32x32xf32>
      %c0_47 = arith.constant 0 : index
      %c0_48 = arith.constant 0 : index
      %134 = vector.load %arg12[%c0_47, %c0_48] : memref<1x32xf32, #tpu.memory_space<vmem>>, vector<1x32xf32>
      %c0_49 = arith.constant 0 : index
      %c0_50 = arith.constant 0 : index
      %135 = vector.load %arg13[%c0_49, %c0_50] : memref<1x32xf32, #tpu.memory_space<vmem>>, vector<1x32xf32>
      %cst_51 = arith.constant dense<0.000000e+00> : vector<32xf32>
      %136 = vector.multi_reduction <add>, %133, %cst_51 [1] : vector<32x32xf32> to vector<32xf32>
      %137 = vector.shape_cast %136 : vector<32xf32> to vector<32x1xf32>
      %cst_52 = arith.constant 3.200000e+01 : f32
      %138 = vector.broadcast %cst_52 : f32 to vector<32x1xf32>
      %139 = arith.divf %137, %138 : vector<32x1xf32>
      %140 = vector.broadcast %139 : vector<32x1xf32> to vector<32x32xf32>
      %141 = arith.subf %133, %140 : vector<32x32xf32>
      %142 = arith.mulf %141, %141 : vector<32x32xf32>
      %cst_53 = arith.constant dense<0.000000e+00> : vector<32xf32>
      %143 = vector.multi_reduction <add>, %142, %cst_53 [1] : vector<32x32xf32> to vector<32xf32>
      %144 = vector.shape_cast %143 : vector<32xf32> to vector<32x1xf32>
      %cst_54 = arith.constant 3.200000e+01 : f32
      %145 = vector.broadcast %cst_54 : f32 to vector<32x1xf32>
      %146 = arith.divf %144, %145 : vector<32x1xf32>
      %147 = vector.broadcast %139 : vector<32x1xf32> to vector<32x32xf32>
      %148 = arith.subf %133, %147 : vector<32x32xf32>
      %cst_55 = arith.constant 9.99999974E-6 : f32
      %149 = vector.broadcast %cst_55 : f32 to vector<32x1xf32>
      %150 = arith.addf %146, %149 : vector<32x1xf32>
      %151 = math.rsqrt %150 : vector<32x1xf32>
      %152 = vector.broadcast %151 : vector<32x1xf32> to vector<32x32xf32>
      %153 = arith.mulf %148, %152 : vector<32x32xf32>
      %154 = vector.broadcast %134 : vector<1x32xf32> to vector<32x32xf32>
      %155 = arith.mulf %153, %154 : vector<32x32xf32>
      %156 = vector.broadcast %135 : vector<1x32xf32> to vector<32x32xf32>
      %157 = arith.addf %155, %156 : vector<32x32xf32>
      %158 = arith.truncf %157 : vector<32x32xf32> to vector<32x32xbf16>
      %c0_56 = arith.constant 0 : index
      %c0_57 = arith.constant 0 : index
      %159 = vector.load %arg11[%c0_56, %c0_57] : memref<1x32xf32, #tpu.memory_space<vmem>>, vector<1x32xf32>
      %160 = vector.broadcast %159 : vector<1x32xf32> to vector<32x32xf32>
      %161 = arith.addf %157, %160 : vector<32x32xf32>
      %c0_i32_58 = arith.constant 0 : i32
      %c128_i32 = arith.constant 128 : i32
      %162 = arith.muli %c0_i32_58, %c128_i32 : i32
      %163 = tpu.assume_multiple %162, 128 : i32
      %c0_59 = arith.constant 0 : index
      %164 = arith.index_cast %163 : i32 to index
      %165 = vector.load %arg8[%c0_59, %164] : memref<32x128xbf16, #tpu.memory_space<vmem>>, vector<32x128xbf16>
      %cst_60 = arith.constant dense<0.000000e+00> : vector<32x128xf32>
      %166 = tpu.matmul %158, %165, %cst_60 {dimension_numbers = #tpu.dot_dimension_numbers<[1], [0], [0], [1], [0, 0, 1, 1], [], []>} : vector<32x32xbf16>, vector<32x128xbf16>, vector<32x128xf32> -> vector<32x128xf32>
      %c0_61 = arith.constant 0 : index
      %167 = arith.index_cast %163 : i32 to index
      %168 = vector.load %arg9[%c0_61, %167] : memref<1x128xf32, #tpu.memory_space<vmem>>, vector<1x128xf32>
      %169 = vector.broadcast %168 : vector<1x128xf32> to vector<32x128xf32>
      %170 = arith.addf %166, %169 : vector<32x128xf32>
      %cst_62 = arith.constant 5.000000e-01 : f32
      %171 = vector.broadcast %cst_62 : f32 to vector<32x128xf32>
      %172 = arith.mulf %171, %170 : vector<32x128xf32>
      %cst_63 = arith.constant 0.707106769 : f32
      %173 = vector.broadcast %cst_63 : f32 to vector<32x128xf32>
      %174 = arith.mulf %170, %173 : vector<32x128xf32>
      %175 = math.erf %174 : vector<32x128xf32>
      %cst_64 = arith.constant 1.000000e+00 : f32
      %176 = vector.broadcast %cst_64 : f32 to vector<32x128xf32>
      %177 = arith.addf %176, %175 : vector<32x128xf32>
      %178 = arith.mulf %172, %177 : vector<32x128xf32>
      %179 = arith.truncf %178 : vector<32x128xf32> to vector<32x128xbf16>
      %180 = arith.index_cast %163 : i32 to index
      %c0_65 = arith.constant 0 : index
      %181 = vector.load %arg10[%180, %c0_65] : memref<128x32xbf16, #tpu.memory_space<vmem>>, vector<128x32xbf16>
      %cst_66 = arith.constant dense<0.000000e+00> : vector<32x32xf32>
      %182 = tpu.matmul %179, %181, %cst_66 {dimension_numbers = #tpu.dot_dimension_numbers<[1], [0], [0], [1], [0, 0, 1, 1], [], []>} : vector<32x128xbf16>, vector<128x32xbf16>, vector<32x32xf32> -> vector<32x32xf32>
      %183 = arith.addf %161, %182 : vector<32x32xf32>
      %c1_i32_67 = arith.constant 1 : i32
      %c0_68 = arith.constant 0 : index
      %c0_69 = arith.constant 0 : index
      %184 = vector.load %arg14[%c0_68, %c0_69] : memref<1x32xf32, #tpu.memory_space<vmem>>, vector<1x32xf32>
      %c0_70 = arith.constant 0 : index
      %c0_71 = arith.constant 0 : index
      %185 = vector.load %arg15[%c0_70, %c0_71] : memref<1x32xf32, #tpu.memory_space<vmem>>, vector<1x32xf32>
      %cst_72 = arith.constant dense<0.000000e+00> : vector<32xf32>
      %186 = vector.multi_reduction <add>, %183, %cst_72 [1] : vector<32x32xf32> to vector<32xf32>
      %187 = vector.shape_cast %186 : vector<32xf32> to vector<32x1xf32>
      %cst_73 = arith.constant 3.200000e+01 : f32
      %188 = vector.broadcast %cst_73 : f32 to vector<32x1xf32>
      %189 = arith.divf %187, %188 : vector<32x1xf32>
      %190 = vector.broadcast %189 : vector<32x1xf32> to vector<32x32xf32>
      %191 = arith.subf %183, %190 : vector<32x32xf32>
      %192 = arith.mulf %191, %191 : vector<32x32xf32>
      %cst_74 = arith.constant dense<0.000000e+00> : vector<32xf32>
      %193 = vector.multi_reduction <add>, %192, %cst_74 [1] : vector<32x32xf32> to vector<32xf32>
      %194 = vector.shape_cast %193 : vector<32xf32> to vector<32x1xf32>
      %cst_75 = arith.constant 3.200000e+01 : f32
      %195 = vector.broadcast %cst_75 : f32 to vector<32x1xf32>
      %196 = arith.divf %194, %195 : vector<32x1xf32>
      %197 = vector.broadcast %189 : vector<32x1xf32> to vector<32x32xf32>
      %198 = arith.subf %183, %197 : vector<32x32xf32>
      %cst_76 = arith.constant 9.99999974E-6 : f32
      %199 = vector.broadcast %cst_76 : f32 to vector<32x1xf32>
      %200 = arith.addf %196, %199 : vector<32x1xf32>
      %201 = math.rsqrt %200 : vector<32x1xf32>
      %202 = vector.broadcast %201 : vector<32x1xf32> to vector<32x32xf32>
      %203 = arith.mulf %198, %202 : vector<32x32xf32>
      %204 = vector.broadcast %184 : vector<1x32xf32> to vector<32x32xf32>
      %205 = arith.mulf %203, %204 : vector<32x32xf32>
      %206 = vector.broadcast %185 : vector<1x32xf32> to vector<32x32xf32>
      %207 = arith.addf %205, %206 : vector<32x32xf32>
      scf.yield %207 : vector<32x32xf32>
    }
    %c0_11 = arith.constant 0 : index
    %c0_12 = arith.constant 0 : index
    %c0_13 = arith.constant 0 : index
    %33 = vector.load %arg16[%c0_11, %c0_12, %c0_13] : memref<1x32x32xf32, #tpu.memory_space<vmem>>, vector<1x32x32xf32>
    %34 = vector.shape_cast %33 : vector<1x32x32xf32> to vector<32x32xf32>
    %35 = vector.shape_cast %32 : vector<32x32xf32> to vector<1x32x32xf32>
    tpu.vector_store %arg16[%c0_11, %c0_12, %c0_13], %35 {strides = array<i32>} : memref<1x32x32xf32, #tpu.memory_space<vmem>>, vector<1x32x32xf32>,
    return
  }
  func.func @transform_0(%arg0: i32) -> (i32, i32, i32) {
    %c0_i32 = arith.constant 0 : i32
    %c0_i32_0 = arith.constant 0 : i32
    %c0_i32_1 = arith.constant 0 : i32
    return %arg0, %c0_i32, %c0_i32_0 : i32, i32, i32
  }
  func.func @transform_1(%arg0: i32) -> (i32, i32, i32) {
    %c0_i32 = arith.constant 0 : i32
    %c0_i32_0 = arith.constant 0 : i32
    %c0_i32_1 = arith.constant 0 : i32
    return %arg0, %c0_i32, %c0_i32_0 : i32, i32, i32
  }
  func.func @transform_2(%arg0: i32) -> (i32, i32, i32) {
    %c0_i32 = arith.constant 0 : i32
    %c0_i32_0 = arith.constant 0 : i32
    %c0_i32_1 = arith.constant 0 : i32
    return %arg0, %c0_i32, %c0_i32_0 : i32, i32, i32
  }
  func.func @transform_3(%arg0: i32) -> (i32, i32) {
    %c0_i32 = arith.constant 0 : i32
    %c0_i32_0 = arith.constant 0 : i32
    %c0_i32_1 = arith.constant 0 : i32
    return %c0_i32, %c0_i32_0 : i32, i32
  }
  func.func @transform_4(%arg0: i32) -> (i32, i32) {
    %c0_i32 = arith.constant 0 : i32
    %c0_i32_0 = arith.constant 0 : i32
    %c0_i32_1 = arith.constant 0 : i32
    return %c0_i32, %c0_i32_0 : i32, i32
  }
  func.func @transform_5(%arg0: i32) -> (i32, i32) {
    %c0_i32 = arith.constant 0 : i32
    %c0_i32_0 = arith.constant 0 : i32
    %c0_i32_1 = arith.constant 0 : i32
    return %c0_i32, %c0_i32_0 : i32, i32
  }
  func.func @transform_6(%arg0: i32) -> (i32, i32) {
    %c0_i32 = arith.constant 0 : i32
    %c0_i32_0 = arith.constant 0 : i32
    %c0_i32_1 = arith.constant 0 : i32
    return %c0_i32, %c0_i32_0 : i32, i32
  }
  func.func @transform_7(%arg0: i32) -> (i32, i32) {
    %c0_i32 = arith.constant 0 : i32
    %c0_i32_0 = arith.constant 0 : i32
    %c0_i32_1 = arith.constant 0 : i32
    return %c0_i32, %c0_i32_0 : i32, i32
  }
  func.func @transform_8(%arg0: i32) -> (i32, i32) {
    %c0_i32 = arith.constant 0 : i32
    %c0_i32_0 = arith.constant 0 : i32
    %c0_i32_1 = arith.constant 0 : i32
    return %c0_i32, %c0_i32_0 : i32, i32
  }
  func.func @transform_9(%arg0: i32) -> (i32, i32) {
    %c0_i32 = arith.constant 0 : i32
    %c0_i32_0 = arith.constant 0 : i32
    %c0_i32_1 = arith.constant 0 : i32
    return %c0_i32, %c0_i32_0 : i32, i32
  }
  func.func @transform_10(%arg0: i32) -> (i32, i32) {
    %c0_i32 = arith.constant 0 : i32
    %c0_i32_0 = arith.constant 0 : i32
    %c0_i32_1 = arith.constant 0 : i32
    return %c0_i32, %c0_i32_0 : i32, i32
  }
  func.func @transform_11(%arg0: i32) -> (i32, i32) {
    %c0_i32 = arith.constant 0 : i32
    %c0_i32_0 = arith.constant 0 : i32
    %c0_i32_1 = arith.constant 0 : i32
    return %c0_i32, %c0_i32_0 : i32, i32
  }
  func.func @transform_12(%arg0: i32) -> (i32, i32) {
    %c0_i32 = arith.constant 0 : i32
    %c0_i32_0 = arith.constant 0 : i32
    %c0_i32_1 = arith.constant 0 : i32
    return %c0_i32, %c0_i32_0 : i32, i32
  }
  func.func @transform_13(%arg0: i32) -> (i32, i32) {
    %c0_i32 = arith.constant 0 : i32
    %c0_i32_0 = arith.constant 0 : i32
    %c0_i32_1 = arith.constant 0 : i32
    return %c0_i32, %c0_i32_0 : i32, i32
  }
  func.func @transform_14(%arg0: i32) -> (i32, i32) {
    %c0_i32 = arith.constant 0 : i32
    %c0_i32_0 = arith.constant 0 : i32
    %c0_i32_1 = arith.constant 0 : i32
    return %c0_i32, %c0_i32_0 : i32, i32
  }
  func.func @transform_15(%arg0: i32) -> (i32, i32, i32) {
    %c0_i32 = arith.constant 0 : i32
    %c0_i32_0 = arith.constant 0 : i32
    %c0_i32_1 = arith.constant 0 : i32
    return %arg0, %c0_i32, %c0_i32_0 : i32, i32, i32
  }
}

</mosaic_0001>

<bundles_post_ra>
// kernel: tpu_custom_call.1
= control target key start
LH: loop header
LB: loop body
LE: loop exit
PB: predicated region body
PF: predicated region fallthrough
CT: control target
= control target key end

     0   :  { %s3112_s0 = inlined_call_operand.vmem [shape: f32[2,32,32], index: 0, kind: input, shape index: {}]   ;;  %s3113_s1 = inlined_call_operand.vmem [shape: f32[2,32,1], index: 1, kind: input, shape index: {}]   ;;  %s3114_s2 = inlined_call_operand.vmem [shape: f32[2,1,32], index: 2, kind: input, shape index: {}]   ;;  %s3115_s3 = inlined_call_operand.vmem [shape: bf16[32,96], index: 3, kind: input, shape index: {}]   ;;  %s3116_s4 = inlined_call_operand.vmem [shape: f32[1,96], index: 4, kind: input, shape index: {}]   ;;  %s3117_s5 = inlined_call_operand.vmem [shape: bf16[32,32], index: 5, kind: input, shape index: {}]   ;;  %s3118_s6 = inlined_call_operand.vmem [shape: f32[1,32], index: 6, kind: input, shape index: {}]   ;;  %s3119_s7 = inlined_call_operand.vmem [shape: bf16[32,128], index: 7, kind: input, shape index: {}]   ;;  %s3120_s8 = inlined_call_operand.vmem [shape: f32[1,128], index: 8, kind: input, shape index: {}]   ;;  %s3121_s9 = inlined_call_operand.vmem [shape: bf16[128,32], index: 9, kind: input, shape index: {}]   ;;  %s3122_s10 = inlined_call_operand.vmem [shape: f32[1,32], index: 10, kind: input, shape index: {}]   ;;  %s3123_s11 = inlined_call_operand.vmem [shape: f32[1,32], index: 11, kind: input, shape index: {}]   ;;  %s3124_s12 = inlined_call_operand.vmem [shape: f32[1,32], index: 12, kind: input, shape index: {}]   ;;  %s3125_s13 = inlined_call_operand.vmem [shape: f32[1,32], index: 13, kind: input, shape index: {}]   ;;  %s3126_s14 = inlined_call_operand.vmem [shape: f32[1,32], index: 14, kind: input, shape index: {}]   ;;  %s3127_s15 = inlined_call_operand.hbm [shape: f32[2,32,32], index: 15, kind: output, shape index: {}]  }
   0x1   :  { %3132 = sst [smem:[#allocation9_spill]] %s3112_s0 }
   0x2   :  { %20 = vsyncpa [#allocation4], 0 }
   0x3   :  { %22 = vsyncpa [#allocation4 + $0x1], 0  ;;  %s2670_s18 = smov 0   ;;  %s2672_s19 = smov 0  }
   0x4   :  { %s2674_s20 = smov 0   ;;  %s2676_s21 = smov 0  }
   0x5 LB: > { %3133 = sst [smem:[#allocation6_spill]] %s2546_s20  ;;  %s2691_s22 = sadd.s32 4294967295, %s2550_s21   ;;  %s2550_s21 = sphi %s2676_s21, %s3148_s21   ;;  %s2546_s20 = sphi %s2674_s20, %s3150_s20   ;;  %s2542_s19 = sphi %s2672_s19, %s3152_s19   ;;  %s2538_s18 = sphi %s2670_s18, %s3151_s18  }
   0x6   : > { %s2036_s23 = sadd.s32 4294967294, %s2550_s21   ;;  %s2695_s24 = sadd.s32 1, %s2550_s21  }
   0x7   : > { %3134 = sst [smem:[#allocation7_spill]] %s2695_s24  ;;  %s365_s25 = sadd.s32 1, %s2546_s20 }
   0x8   : > { %s362_s26 = ssub.s32 %s2550_s21, %s2695_s24  ;;  %p375_p0 = scmp.ne.s32.totalorder %s2546_s20, %s2542_s19 }
   0x9   : > { %p363_p1 = scmp.eq.s32.totalorder %s362_s26, 0  ;;  %p376_p2 = scmp.eq.s32.totalorder %s2691_s22, 1 }
   0xa   : > { %p381_p3 = scmp.ne.s32.totalorder %s2542_s19, %s2538_s18  ;;  %p382_p4 = scmp.eq.s32.totalorder %s2036_s23, 1 }
   0xb   : > { %s2706_s27 = scalar_select %p363_p1, %s2546_s20, %s365_s25  }
   0xc   : > { %p2708_p5 = por %p376_p2, %p375_p0  ;;  %p2712_p6 = por %p382_p4, %p381_p3 }
   0xd   : > { %3135 = sst [smem:[#allocation8_spill]] %s2706_s27  ;;  %p2039_p7 = scmp.ge.s32.totalorder %s2550_s21, 1 }
   0xe   : > { %p458_p8 = scmp.lt.s32.totalorder %s2550_s21, 3 }
  0x10   : > { %p459_p9 = pnand %p2039_p7, %p458_p8 }
  0x11   : > { %p514_p10 = scmp.lt.s32.totalorder (!%p459_p9), %s2691_s22, 1  ;;  %v2572_v0 = vmov (!%p459_p9), 0   ;;  %s3138_s0 = sld [smem:[#allocation9_spill]] (!%p459_p9)  ;;  %v537_v9 = vlaneseq (!%p459_p9) }
  0x12   : > { %462 = sbr.rel (%p459_p9) target bundleno = 4418 (0x1142), region = 80  ;;  %2365 = vset.pattern.permute.xlu1 (!%p459_p9), %v2572_v0  ;;  %2364 = vset.pattern.permute.xlu0 (!%p459_p9), %v2572_v0  ;;  %s3131_s24 = sand.u32 (!%p459_p9), 1, %s2542_s19  }
  0x13   : > { %s2729_s17 = sshll.u32 (!%p459_p9), %s3131_s24, 5  ;;  %v538_v10 = vshrl.u32 (!%p459_p9), %v537_v9, 7  ;;  %v543_v11 = vand.u32 (!%p459_p9), 127, %v537_v9 }
  0x15   : > { %v540_v12 = vadd.s32 (!%p459_p9), 16, %v538_v10  ;;  %vm574_vm0 = vcmp.ge.s32.totalorder (!%p459_p9), %v543_v11, 14  ;;  %vm575_vm1 = vcmp.lt.s32.totalorder (!%p459_p9), %v543_v11, 22  ;;  %v539_v13 = vadd.s32 (!%p459_p9), 8, %v538_v10 }
  0x16   : > { %v541_v14 = vadd.s32 (!%p459_p9), 24, %v538_v10  ;;  %vm2735_vm2 = vmand (!%p459_p9), %vm574_vm0, %vm575_vm1 }
  0x17   : > { %vm587_vm3 = vcmp.gt.s32.totalorder (!%p459_p9), %v543_v11, %v540_v12  ;;  %vm582_vm4 = vcmp.ge.s32.totalorder (!%p459_p9), %v539_v13, 14  ;;  %vm586_vm5 = vcmp.gt.s32.totalorder (!%p459_p9), %v543_v11, %v539_v13 }
  0x18   : > { %vm2741_vm6 = vmand (!%p459_p9), %vm2735_vm2, %vm587_vm3  ;;  %vm588_vm7 = vcmp.gt.s32.totalorder (!%p459_p9), %v543_v11, %v541_v14 }
  0x19   : > { %s515_s30 = scalar_select %p514_p10, %s2691_s22, 1  ;;  %vm590_vm8 = vmand %vm582_vm4, %vm586_vm5 }
  0x1a   : > { %vm600_vm9 = vmand %vm2735_vm2, %vm588_vm7 }
  0x1b   : > { %s2095_s16 = sshll.u32 %s515_s30, 5  ;;  %s526_s23 = scalar_lea.vmem %s3114_s2, %s515_s30  ;;  %vm598_vm10 = vmand %vm2735_vm2, %vm590_vm8 }
  0x1c   : > { %s523_s25 = scalar_lea.vmem %s3113_s1, %s2095_s16  ;;  %s518_s20 = scalar_lea.vmem %s3138_s0, %s2095_s16  ;;  %v2045_v15 = vld [vmem:[%s526_s23] ss:$0 sm:$0xff] }
  0x1d   : > { %v534_v1 = vld [vmem:[%s523_s25 + $0x10] sm:$0xff]  ;;  %v528_v2 = vld [vmem:[%s518_s20] sm:$0xff]   ;;  %v529_v3 = vld [vmem:[%s518_s20 + $0x8] sm:$0xff]   ;;  %s2772_s30 = smov 0  }
  0x1e   : > { %556 = vperm.xlu1 %2365, %v534_v1   ;;  %v530_v4 = vld [vmem:[%s518_s20 + $0x10] sm:$0xff]   ;;  %v531_v5 = vld [vmem:[%s518_s20 + $0x18] sm:$0xff]   ;;  %v532_v6 = vld [vmem:[%s523_s25] sm:$0xff]  ;;  %s2762_s20 = scalar_lea.vmem [#allocation3], %s2729_s17 }
  0x1f   : > { %546 = vperm.xlu0 %2364, %v532_v6   ;;  %v535_v7 = vld [vmem:[%s523_s25 + $0x18] sm:$0xff]  ;;  %v533_v8 = vld [vmem:[%s523_s25 + $0x8] sm:$0xff] }
  0x22   : > { %561 = vperm.xlu1 %2365, %v535_v7  }
  0x23   : > { %551 = vperm.xlu0 %2364, %v533_v8  }
  0x9d   : > { %v557_v17 = vpop.permute.xlu1 %556 }
  0x9e   : > { %v572_v19 = vmul.f32 %v2045_v15, %v557_v17  ;;  %v547_v20 = vpop.permute.xlu0 %546 }
  0x9f   : > { %v570_v21 = vmul.f32 %v2045_v15, %v547_v20 }
  0xa0   : > { %v603_v23 = vsel %vm2741_vm6, 0.0, %v572_v19 }
  0xa1   : > { %v562_v22 = vpop.permute.xlu1 %561  ;;  %v601_v26 = vsel %vm2735_vm2, 0.0, %v570_v21  ;;  %v607_v29 = vsel %vm575_vm1, %v603_v23, -1e+30 }
  0xa2   : > { %v573_v24 = vmul.f32 %v2045_v15, %v562_v22  ;;  %v552_v25 = vpop.permute.xlu0 %551  ;;  %v605_v32 = vsel %vm575_vm1, %v601_v26, -1e+30 }
  0xa3   : > { %v571_v27 = vmul.f32 %v2045_v15, %v552_v25 }
  0xa4   : > { %v604_v28 = vsel %vm600_vm9, 0.0, %v573_v24 }
  0xa5   : > { %v608_v30 = vsel %vm575_vm1, %v604_v28, -1e+30  ;;  %v602_v31 = vsel %vm598_vm10, 0.0, %v571_v27 }
  0xa6   : > { %v2756_v33 = vpack.c.bf16 %v608_v30, %v607_v29  ;;  %v606_v34 = vsel %vm575_vm1, %v602_v31, -1e+30 }
  0xa7   : > { %v2759_v35 = vpack.c.bf16 %v606_v34, %v605_v32 }
  0xa8 LB: >> { %v2366_v36 = vld [vmem:[%s3115_s3] sm:$0xff]   ;;  %v2367_v37 = vld [vmem:[%s3115_s3 + $0x8] sm:$0xff]   ;;  %vm646_vm11 = vcmask 261120   ;;  %v621_v38 = vpack.c.bf16 %v2562_v3, %v2566_v2  ;;  %v622_v39 = vpack.c.bf16 %v2554_v5, %v2558_v4  ;;  %vm714_vm12 = vcmask 64512   ;;  %s2573_s25 = smov 96   ;;  %s2574_s26 = smov 64   ;;  %s2570_s30 = sphi %s2772_s30, %s616_s30   ;;  %v2566_v2 = vphi %v528_v2, %v3146_v2   ;;  %v2562_v3 = vphi %v529_v3, %v3145_v3   ;;  %v2558_v4 = vphi %v530_v4, %v3144_v4   ;;  %v2554_v5 = vphi %v531_v5, %v3143_v5  }
  0xa9   : >> { %2152 = vmatprep.subr.bf16.mxu0 %v2366_v36  ;;  %v2046_v41 = vld [vmem:[%s3116_s4] ss:$0 sm:$0xff]  ;;  %v2819_v55 = vunpack.c.l.bf16 %v2756_v33  ;;  %v2822_v56 = vunpack.c.l.bf16 %v2759_v35  ;;  %v2825_v58 = vunpack.c.h.bf16 %v2759_v35  ;;  %v2831_v1 = vunpack.c.h.bf16 %v2756_v33  ;;  %s2575_s17 = smov 88   ;;  %s2576_s27 = smov 120  }
  0xaa   : >> { %2153 = vmatpush3.bf16.msra.mxu0 %v2366_v36  ;;  %2156 = vmatprep.mubr.msk.bf16.mxu0 %vm646_vm11, %v621_v38  ;;  %s2577_s16 = smov 56   ;;  %s2578_s23 = smov 80   ;;  %vm1073_vm13 = vcmask 130112   ;;  %vm1262_vm14 = vcmask 195712   ;;  %vm1451_vm15 = vcmask 261312  }
  0xab   : >> { %2154 = vmatprep.subr.bf16.mxu0 %v2367_v37  ;;  %s616_s30 = sadd.s32 1, %s2570_s30  }
  0xac   : >> { %p613_p11 = scmp.ge.s32.totalorder %s616_s30, 2  }
  0xad   : > { %s2097_s0 = sshll.u32 (%p613_p11), %s2691_s22, 9  ;;  %s2587_s22 = smov (%p613_p11), [#allocation3]  }
  0xae   : >> { %2155 = vmatpush3.bf16.msra.mxu0 %v2367_v37 }
  0xb1   : >> { %2157 = vmatmul.mubr.msk.bf16.vlgmr.msra.gmra.mrb[0].mxu0 %vm646_vm11, %v622_v39 }
 0x184   : >> { %v2158_v40 = vpop.f32.mrb[0].mxu0 }
 0x185   : >> { %v687_v42 = vpop.f32.mrb[1].mxu0  ;;  %v696_v44 = vadd.f32 %v2158_v40, %v2046_v41 }
 0x186   : >> { %v2159_v43 = vpop.f32.mrb[2].mxu0  ;;  %v688_v47 = vadd.f32 %v2046_v41, %v687_v42 }
 0x187   : >> { %v699_v45 = vadd.f32 %v2159_v43, %v2046_v41  ;;  %v690_v46 = vpop.f32.mrb[3].mxu0 }
 0x188   : >> { %v691_v48 = vadd.f32 %v2046_v41, %v690_v46 }
 0x189   : >> { %v2804_v49 = vpack.c.bf16 %v699_v45, %v696_v44 }
 0x18a   : >> { %v2806_v50 = vpack.c.bf16 %v691_v48, %v688_v47 }
 0x18c   : >> { %710 = vrot.lane.b32.xlu0 %v2806_v50, %s2573_s25  ;;  %2164 = vmatprep.mubr.msk.bf16.mxu0 %vm714_vm12, %v2806_v50 }
 0x190   : >> { %712 = vrot.lane.b32.xlu0 %v2804_v49, %s2573_s25  ;;  %s2579_s25 = smov 112  }
 0x1fe   : >> { %v711_v51 = vpop.permute.xlu0 %710 }
 0x1ff   : >> { %v722_v52 = vsel %vm714_vm12, %v711_v51, 0  ;;  %2260 = vmatprep.subr.msk.bf16.mxu0 %vm714_vm12, %v711_v51 }
 0x200   : >> { %2161 = vmatpush3.bf16.xpose.msra.mxu0 %v722_v52 }
 0x202   : >> { %v713_v53 = vpop.permute.xlu0 %712 }
 0x203   : >> { %2261 = vmatprep.subr.msk.bf16.mxu0 %vm714_vm12, %v713_v53  ;;  %v725_v54 = vsel %vm714_vm12, %v713_v53, 0 }
 0x208   : >> { %2163 = vmatpush3.bf16.xpose.msra.mxu0 %v725_v54 }
 0x20f   : >> { %2165 = vmatmul.mubr.msk.bf16.vlgmr.msra.gmra.mrb[4].mxu0 %vm714_vm12, %v2804_v49 }
 0x2e2   : >> { %v2166_v57 = vpop.f32.mrb[4].mxu0 }
 0x2e3   : >> { %v770_v59 = vadd.f32 %v2166_v57, %v2819_v55  ;;  %v761_v60 = vpop.f32.mrb[5].mxu0 }
 0x2e4   : >> { %v762_v61 = vadd.f32 %v761_v60, %v2822_v56  ;;  %v2167_v62 = vpop.f32.mrb[6].mxu0 }
 0x2e5   : >> { %v764_v63 = vpop.f32.mrb[7].mxu0  ;;  %v782_v0 = vsel %vm646_vm11, %v770_v59, -inf  ;;  %v773_v8 = vadd.f32 %v2167_v62, %v2831_v1 }
 0x2e6   : >> { %v765_v6 = vadd.f32 %v764_v63, %v2825_v58  ;;  %783 = vmax.xlane.f32.xlu0 %v782_v0  ;;  %v776_v7 = vsel %vm646_vm11, %v762_v61, -inf }
 0x2e7   : >> { %777 = vmax.xlane.f32.xlu1 %v776_v7  ;;  %v785_v10 = vsel %vm646_vm11, %v773_v8, -inf }
 0x2e8   : >> { %v779_v9 = vsel %vm646_vm11, %v765_v6, -inf }
 0x2eb   : >> { %780 = vmax.xlane.f32.xlu1 %v779_v9 }
 0x2ef   : >> { %786 = vmax.xlane.f32.xlu1 %v785_v10 }
 0x2fc   : >> { %824 = vrot.lane.b32.xlu0 %v2804_v49, %s2574_s26 }
 0x300   : >> { %822 = vrot.lane.b32.xlu1 %v2806_v50, %s2574_s26  ;;  %s2580_s26 = smov 48  }
 0x373   : >> { %v784_v11 = vpop.xlane.xlu0 %783 }
 0x374   : >> { %v790_v12 = vsub.f32 %v770_v59, %v784_v11  ;;  %v778_v13 = vpop.xlane.xlu1 %777 }
 0x375   : >> { %v788_v14 = vsub.f32 %v762_v61, %v778_v13 }
 0x376   : >> { %v796_v15 = vmul.f32 1.442695, %v790_v12 }
 0x377   : >> { %v792_v16 = vmul.f32 1.442695, %v788_v14  ;;  %v825_v25 = vpop.permute.xlu0 %824 }
 0x378   : >> { %2380 = vpow2.f32 %v796_v15  ;;  %v781_v17 = vpop.xlane.xlu1 %780 }
 0x379   : >> { %2382 = vpow2.f32 %v792_v16  ;;  %v789_v18 = vsub.f32 %v765_v6, %v781_v17 }
 0x37b   : >> { %v794_v21 = vmul.f32 1.442695, %v789_v18 }
 0x37c   : >> { %v787_v19 = vpop.xlane.xlu1 %786 }
 0x37d   : >> { %v791_v20 = vsub.f32 %v773_v8, %v787_v19 }
 0x37f   : >> { %v798_v22 = vmul.f32 1.442695, %v791_v20 }
 0x380   : >> { %v823_v23 = vpop.permute.xlu1 %822 }
 0x381   : >> { %2384 = vpow2.f32 %v798_v22  ;;  %2168 = vmatprep.subr.bf16.mxu0 %v823_v23 }
 0x382   : >> { %v2381_v24 = vpop.eup %2380  ;;  %2169 = vmatpush3.bf16.msra.mxu0 %v823_v23  ;;  %2386 = vpow2.f32 %v794_v21 }
 0x383   : >> { %2170 = vmatprep.subr.bf16.mxu0 %v825_v25  ;;  %v806_v26 = vsel %vm646_vm11, %v2381_v24, 0.0  ;;  %v2383_v27 = vpop.eup %2382 }
 0x384   : >> { %807 = vadd.xlane.f32.xlu1 %v806_v26  ;;  %v800_v28 = vsel %vm646_vm11, %v2383_v27, 0.0 }
 0x386   : >> { %2171 = vmatpush3.bf16.msra.mxu0 %v825_v25 }
 0x388   : >> { %801 = vadd.xlane.f32.xlu1 %v800_v28 }
 0x38b   : >> { %v2385_v29 = vpop.eup %2384 }
 0x38c   : >> { %v809_v30 = vsel %vm646_vm11, %v2385_v29, 0.0  ;;  %v2387_v31 = vpop.eup %2386 }
 0x38d   : >> { %810 = vadd.xlane.f32.xlu1 %v809_v30  ;;  %v803_v32 = vsel %vm646_vm11, %v2387_v31, 0.0 }
 0x391   : >> { %804 = vadd.xlane.f32.xlu1 %v803_v32 }
 0x3a2   : >> { %891 = vrot.lane.b32.xlu1 %v2806_v50, %s2575_s17 }
 0x3a6   : >> { %893 = vrot.lane.b32.xlu1 %v2804_v49, %s2575_s17  ;;  %s2581_s17 = smov 72  }
 0x3aa   : >> { %887 = vrot.lane.b32.xlu1 %v2806_v50, %s2576_s27 }
 0x3ae   : >> { %889 = vrot.lane.b32.xlu1 %v2804_v49, %s2576_s27  ;;  %s2582_s27 = smov 104  }
 0x411   : >> { %v808_v34 = vpop.xlane.xlu1 %807 }
 0x415   : >> { %v802_v36 = vpop.xlane.xlu1 %801 }
 0x41a   : >> { %v811_v37 = vpop.xlane.xlu1 %810 }
 0x41b   : >> { %2388 = vrcp.f32 %v811_v37 }
 0x41c   : >> { %2390 = vrcp.f32 %v802_v36 }
 0x41d   : >> { %2392 = vrcp.f32 %v808_v34 }
 0x41e   : >> { %v805_v38 = vpop.xlane.xlu1 %804 }
 0x41f   : >> { %2394 = vrcp.f32 %v805_v38 }
 0x422   : >> { %v892_v39 = vpop.permute.xlu1 %891 }
 0x423   : >> { %2262 = vmatprep.subr.msk.bf16.mxu0 %vm714_vm12, %v892_v39  ;;  %v902_v53 = vsel %vm714_vm12, %v892_v39, 0 }
 0x425   : >> { %v2389_v40 = vpop.eup %2388 }
 0x426   : >> { %v2391_v41 = vpop.eup %2390  ;;  %v819_v44 = vmul.f32 %v2389_v40, %v2385_v29  ;;  %v894_v45 = vpop.permute.xlu1 %893 }
 0x427   : >> { %v2393_v42 = vpop.eup %2392  ;;  %v816_v46 = vmul.f32 %v2391_v41, %v2383_v27  ;;  %v905_v57 = vsel %vm714_vm12, %v894_v45, 0 }
 0x428   : >> { %v818_v48 = vmul.f32 %v2393_v42, %v2381_v24 }
 0x429   : >> { %v2395_v43 = vpop.eup %2394 }
 0x42a   : >> { %v817_v47 = vmul.f32 %v2395_v43, %v2387_v31  ;;  %v821_v52 = vpack.c.bf16 %v819_v44, %v818_v48  ;;  %v888_v54 = vpop.permute.xlu1 %887 }
 0x42c   : >> { %v820_v51 = vpack.c.bf16 %v817_v47, %v816_v46 }
 0x42e   : >> { %2172 = vmatprep.mubr.msk.bf16.mxu0 %vm646_vm11, %v820_v51  ;;  %v890_v59 = vpop.permute.xlu1 %889 }
 0x42f   : >> { %2173 = vmatmul.mubr.msk.bf16.vlgmr.msra.gmra.mrb[8].mxu0 %vm646_vm11, %v821_v52 }
 0x430   : >> { %2177 = vmatpush3.bf16.xpose.msra.mxu0 %v902_v53  ;;  %2180 = vmatprep.mubr.msk.bf16.mxu0 %vm714_vm12, %v888_v54 }
 0x431   : >> { %2263 = vmatprep.subr.msk.bf16.mxu0 %vm714_vm12, %v894_v45 }
 0x438   : >> { %2179 = vmatpush3.bf16.xpose.msra.mxu0 %v905_v57 }
 0x43f   : >> { %2181 = vmatmul.mubr.msk.bf16.vlgmr.msra.gmra.mrb[12].mxu0 %vm714_vm12, %v890_v59 }
 0x502   : >> { %v2174_v60 = vpop.f32.mrb[8].mxu0 }
 0x503   : >> { %v868_v61 = vpop.f32.mrb[9].mxu0 }
 0x504   : >> { %v2175_v62 = vpop.f32.mrb[10].mxu0 }
 0x505   : >> { %v884_v63 = vpack.c.bf16 %v2175_v62, %v2174_v60  ;;  %v871_v0 = vpop.f32.mrb[11].mxu0 }
 0x506   : >> { %v883_v6 = vpack.c.bf16 %v871_v0, %v868_v61 }
 0x507   : >> { %886 = vst.msk [vmem:[#allocation2 + $0x8] sm:$0xff] %vm714_vm12, %v884_v63 }
 0x508   : >> { %885 = vst.msk [vmem:[#allocation2] sm:$0xff] %vm714_vm12, %v883_v6 }
 0x512   : >> { %v2182_v7 = vpop.f32.mrb[12].mxu0 }
 0x513   : >> { %v941_v8 = vpop.f32.mrb[13].mxu0  ;;  %v950_v12 = vadd.f32 %v2182_v7, %v2819_v55 }
 0x514   : >> { %v942_v9 = vadd.f32 %v941_v8, %v2822_v56  ;;  %v2183_v10 = vpop.f32.mrb[14].mxu0 }
 0x515   : >> { %v944_v11 = vpop.f32.mrb[15].mxu0  ;;  %v953_v16 = vadd.f32 %v2183_v10, %v2831_v1  ;;  %v962_v17 = vsel %vm646_vm11, %v950_v12, -inf }
 0x516   : >> { %v945_v13 = vadd.f32 %v944_v11, %v2825_v58  ;;  %v956_v14 = vsel %vm646_vm11, %v942_v9, -inf }
 0x517   : >> { %957 = vmax.xlane.f32.xlu0 %v956_v14  ;;  %v965_v18 = vsel %vm646_vm11, %v953_v16, -inf }
 0x518   : >> { %v959_v15 = vsel %vm646_vm11, %v945_v13, -inf }
 0x519   : >> { %960 = vmax.xlane.f32.xlu1 %v959_v15 }
 0x51b   : >> { %963 = vmax.xlane.f32.xlu0 %v962_v17 }
 0x51f   : >> { %966 = vmax.xlane.f32.xlu0 %v965_v18 }
 0x52a   : >> { %1002 = vrot.lane.b32.xlu1 %v2806_v50, %s2577_s16 }
 0x5a4   : >> { %v958_v19 = vpop.xlane.xlu0 %957 }
 0x5a5   : >> { %v968_v21 = vsub.f32 %v942_v9, %v958_v19 }
 0x5a6   : >> { %v961_v20 = vpop.xlane.xlu1 %960 }
 0x5a7   : >> { %v972_v25 = vmul.f32 1.442695, %v968_v21  ;;  %v969_v26 = vsub.f32 %v945_v13, %v961_v20 }
 0x5a8   : >> { %v964_v22 = vpop.xlane.xlu0 %963 }
 0x5a9   : >> { %v970_v23 = vsub.f32 %v950_v12, %v964_v22  ;;  %v974_v30 = vmul.f32 1.442695, %v969_v26 }
 0x5aa   : >> { %v1003_v24 = vpop.permute.xlu1 %1002 }
 0x5ab   : >> { %v976_v27 = vmul.f32 1.442695, %v970_v23  ;;  %2184 = vmatprep.subr.bf16.mxu1 %v1003_v24 }
 0x5ac   : >> { %2185 = vmatpush3.bf16.msra.mxu1 %v1003_v24  ;;  %v967_v28 = vpop.xlane.xlu0 %966 }
 0x5ad   : >> { %2396 = vpow2.f32 %v976_v27  ;;  %v971_v29 = vsub.f32 %v953_v16, %v967_v28 }
 0x5ae   : >> { %2398 = vpow2.f32 %v972_v25 }
 0x5af   : >> { %v978_v31 = vmul.f32 1.442695, %v971_v29 }
 0x5b1   : >> { %2400 = vpow2.f32 %v978_v31 }
 0x5b2   : >> { %2402 = vpow2.f32 %v974_v30 }
 0x5b7   : >> { %v2397_v32 = vpop.eup %2396 }
 0x5b8   : >> { %v986_v34 = vsel %vm646_vm11, %v2397_v32, 0.0  ;;  %v2399_v36 = vpop.eup %2398 }
 0x5b9   : >> { %987 = vadd.xlane.f32.xlu1 %v986_v34  ;;  %v980_v38 = vsel %vm646_vm11, %v2399_v36, 0.0 }
 0x5bb   : >> { %v2401_v37 = vpop.eup %2400 }
 0x5bc   : >> { %v989_v39 = vsel %vm646_vm11, %v2401_v37, 0.0  ;;  %v2403_v40 = vpop.eup %2402 }
 0x5bd   : >> { %981 = vadd.xlane.f32.xlu1 %v980_v38  ;;  %990 = vadd.xlane.f32.xlu0 %v989_v39  ;;  %v983_v41 = vsel %vm646_vm11, %v2403_v40, 0.0 }
 0x5c1   : >> { %984 = vadd.xlane.f32.xlu0 %v983_v41 }
 0x5ce   : >> { %1080 = vrot.lane.b32.xlu1 %v2806_v50, %s2578_s23 }
 0x5d2   : >> { %1082 = vrot.lane.b32.xlu1 %v2804_v49, %s2578_s23  ;;  %s2584_s23 = smov 8  }
 0x5d6   : >> { %1078 = vrot.lane.b32.xlu1 %v2804_v49, %s2579_s25 }
 0x5d7   : >> { %1004 = vrot.lane.b32.xlu0 %v2804_v49, %s2577_s16  ;;  %s2583_s16 = smov 40  }
 0x5db   : >> { %1076 = vrot.lane.b32.xlu0 %v2806_v50, %s2579_s25  ;;  %s2585_s25 = smov 16  }
 0x646   : >> { %v988_v42 = vpop.xlane.xlu1 %987 }
 0x64a   : >> { %v982_v43 = vpop.xlane.xlu1 %981  ;;  %v991_v44 = vpop.xlane.xlu0 %990 }
 0x64b   : >> { %2404 = vrcp.f32 %v991_v44 }
 0x64c   : >> { %2406 = vrcp.f32 %v982_v43 }
 0x64d   : >> { %2408 = vrcp.f32 %v988_v42 }
 0x64e   : >> { %v985_v45 = vpop.xlane.xlu0 %984  ;;  %v1081_v47 = vpop.permute.xlu1 %1080 }
 0x64f   : >> { %2410 = vrcp.f32 %v985_v45  ;;  %v1091_v63 = vsel %vm714_vm12, %v1081_v47, 0 }
 0x652   : >> { %v1005_v46 = vpop.permute.xlu0 %1004  ;;  %v1083_v6 = vpop.permute.xlu1 %1082 }
 0x653   : >> { %2186 = vmatprep.subr.bf16.mxu1 %v1005_v46  ;;  %v1094_v7 = vsel %vm714_vm12, %v1083_v6, 0 }
 0x654   : >> { %2187 = vmatpush3.bf16.msra.mxu1 %v1005_v46 }
 0x655   : >> { %2264 = vmatprep.subr.msk.bf16.mxu1 %vm714_vm12, %v1081_v47  ;;  %v2405_v48 = vpop.eup %2404 }
 0x656   : >> { %v2407_v51 = vpop.eup %2406  ;;  %v999_v54 = vmul.f32 %v2405_v48, %v2401_v37  ;;  %v1077_v0 = vpop.permute.xlu0 %1076 }
 0x657   : >> { %v2409_v52 = vpop.eup %2408  ;;  %v996_v57 = vmul.f32 %v2407_v51, %v2399_v36  ;;  %v1079_v8 = vpop.permute.xlu1 %1078 }
 0x658   : >> { %v998_v60 = vmul.f32 %v2409_v52, %v2397_v32 }
 0x659   : >> { %v2411_v53 = vpop.eup %2410 }
 0x65a   : >> { %v997_v59 = vmul.f32 %v2411_v53, %v2403_v40  ;;  %v1001_v62 = vpack.c.bf16 %v999_v54, %v998_v60 }
 0x65c   : >> { %v1000_v61 = vpack.c.bf16 %v997_v59, %v996_v57 }
 0x65e   : >> { %2188 = vmatprep.mubr.msk.bf16.mxu1 %vm646_vm11, %v1000_v61 }
 0x65f   : >> { %2189 = vmatmul.mubr.msk.bf16.vlgmr.msra.gmra.mrb[0].mxu1 %vm646_vm11, %v1001_v62 }
 0x660   : >> { %2193 = vmatpush3.bf16.xpose.msra.mxu1 %v1091_v63  ;;  %2196 = vmatprep.mubr.msk.bf16.mxu1 %vm714_vm12, %v1077_v0 }
 0x661   : >> { %2265 = vmatprep.subr.msk.bf16.mxu1 %vm714_vm12, %v1083_v6 }
 0x668   : >> { %2195 = vmatpush3.bf16.xpose.msra.mxu1 %v1094_v7 }
 0x66f   : >> { %2197 = vmatmul.mubr.msk.bf16.vlgmr.msra.gmra.mrb[4].mxu1 %vm714_vm12, %v1079_v8 }
 0x732   : >> { %v2886_v9 = vpop.f32.mrb[0].mxu1 }
 0x733   : >> { %v2888_v10 = vpop.f32.mrb[1].mxu1 }
 0x734   : >> { %v2890_v11 = vpop.f32.mrb[2].mxu1 }
 0x735   : >> { %v1064_v12 = vpack.c.bf16 %v2890_v11, %v2886_v9  ;;  %v2894_v13 = vpop.f32.mrb[3].mxu1 }
 0x736   : >> { %v1063_v14 = vpack.c.bf16 %v2894_v13, %v2888_v10 }
 0x742   : >> { %v2198_v15 = vpop.f32.mrb[4].mxu1 }
 0x743   : >> { %v1130_v16 = vpop.f32.mrb[5].mxu1  ;;  %v1139_v20 = vadd.f32 %v2198_v15, %v2819_v55 }
 0x744   : >> { %v1131_v17 = vadd.f32 %v1130_v16, %v2822_v56  ;;  %v2199_v18 = vpop.f32.mrb[6].mxu1 }
 0x745   : >> { %v1133_v19 = vpop.f32.mrb[7].mxu1  ;;  %v1142_v24 = vadd.f32 %v2199_v18, %v2831_v1  ;;  %v1151_v25 = vsel %vm646_vm11, %v1139_v20, -inf }
 0x746   : >> { %v1134_v21 = vadd.f32 %v1133_v19, %v2825_v58  ;;  %v1145_v22 = vsel %vm646_vm11, %v1131_v17, -inf }
 0x747   : >> { %1146 = vmax.xlane.f32.xlu0 %v1145_v22  ;;  %v1154_v26 = vsel %vm646_vm11, %v1142_v24, -inf }
 0x748   : >> { %v1148_v23 = vsel %vm646_vm11, %v1134_v21, -inf }
 0x749   : >> { %1149 = vmax.xlane.f32.xlu1 %v1148_v23 }
 0x74b   : >> { %1152 = vmax.xlane.f32.xlu0 %v1151_v25 }
 0x74f   : >> { %1155 = vmax.xlane.f32.xlu0 %v1154_v26 }
 0x75a   : >> { %1191 = vrot.lane.b32.xlu1 %v2806_v50, %s2580_s26 }
 0x7d4   : >> { %v1147_v27 = vpop.xlane.xlu0 %1146 }
 0x7d5   : >> { %v1157_v29 = vsub.f32 %v1131_v17, %v1147_v27 }
 0x7d6   : >> { %v1150_v28 = vpop.xlane.xlu1 %1149 }
 0x7d7   : >> { %v1161_v34 = vmul.f32 1.442695, %v1157_v29  ;;  %v1158_v36 = vsub.f32 %v1134_v21, %v1150_v28 }
 0x7d8   : >> { %v1153_v30 = vpop.xlane.xlu0 %1152 }
 0x7d9   : >> { %v1159_v31 = vsub.f32 %v1139_v20, %v1153_v30  ;;  %v1163_v40 = vmul.f32 1.442695, %v1158_v36 }
 0x7da   : >> { %v1192_v32 = vpop.permute.xlu1 %1191 }
 0x7db   : >> { %v1165_v37 = vmul.f32 1.442695, %v1159_v31  ;;  %2200 = vmatprep.subr.bf16.mxu0 %v1192_v32 }
 0x7dc   : >> { %2201 = vmatpush3.bf16.msra.mxu0 %v1192_v32  ;;  %v1156_v38 = vpop.xlane.xlu0 %1155 }
 0x7dd   : >> { %2412 = vpow2.f32 %v1165_v37  ;;  %v1160_v39 = vsub.f32 %v1142_v24, %v1156_v38 }
 0x7de   : >> { %2414 = vpow2.f32 %v1161_v34 }
 0x7df   : >> { %v1167_v41 = vmul.f32 1.442695, %v1160_v39 }
 0x7e1   : >> { %2416 = vpow2.f32 %v1167_v41 }
 0x7e2   : >> { %2418 = vpow2.f32 %v1163_v40 }
 0x7e7   : >> { %v2413_v42 = vpop.eup %2412 }
 0x7e8   : >> { %v1175_v43 = vsel %vm646_vm11, %v2413_v42, 0.0  ;;  %v2415_v44 = vpop.eup %2414 }
 0x7e9   : >> { %1176 = vadd.xlane.f32.xlu1 %v1175_v43  ;;  %v1169_v46 = vsel %vm646_vm11, %v2415_v44, 0.0 }
 0x7eb   : >> { %v2417_v45 = vpop.eup %2416 }
 0x7ec   : >> { %v1178_v47 = vsel %vm646_vm11, %v2417_v45, 0.0  ;;  %v2419_v48 = vpop.eup %2418 }
 0x7ed   : >> { %1170 = vadd.xlane.f32.xlu1 %v1169_v46  ;;  %1179 = vadd.xlane.f32.xlu0 %v1178_v47  ;;  %v1172_v51 = vsel %vm646_vm11, %v2419_v48, 0.0 }
 0x7f1   : >> { %1173 = vadd.xlane.f32.xlu0 %v1172_v51 }
 0x7fe   : >> { %1269 = vrot.lane.b32.xlu1 %v2806_v50, %s2581_s17 }
 0x802   : >> { %1271 = vrot.lane.b32.xlu1 %v2804_v49, %s2581_s17  ;;  %s3064_s17 = scalar_lea.hbm (%p613_p11), %s3127_s15, %s2097_s0 }
 0x806   : >> { %1267 = vrot.lane.b32.xlu1 %v2804_v49, %s2582_s27 }
 0x807   : >> { %1193 = vrot.lane.b32.xlu0 %v2804_v49, %s2580_s26  ;;  %s2472_s26 = sshll.u32 (%p613_p11), %s2587_s22, 4  ;;  %s2473_s26 = int_to_ptr.vmem [resolvable:$false] %s2472_s26 }
 0x808   : > { %s2474_s24 = scalar_lea.vmem (%p613_p11), %s2473_s26, 1024 }
 0x80b   : >> { %1265 = vrot.lane.b32.xlu0 %v2806_v50, %s2582_s27  ;;  %s1936_s27 = sshll.u32 (%p613_p11), %s2762_s20, 4  ;;  %s3067_s27 = int_to_ptr.vmem [resolvable:$true] %s1936_s27 }
 0x80c   : > { %p2475_p1 = scmp.lt.s32.totalorder (%p613_p11), %s3067_s27, %s2473_s26 }
 0x876   : >> { %v1177_v52 = vpop.xlane.xlu1 %1176 }
 0x87a   : >> { %v1171_v53 = vpop.xlane.xlu1 %1170  ;;  %v1180_v54 = vpop.xlane.xlu0 %1179 }
 0x87b   : >> { %2420 = vrcp.f32 %v1180_v54 }
 0x87c   : >> { %2422 = vrcp.f32 %v1171_v53 }
 0x87d   : >> { %2424 = vrcp.f32 %v1177_v52 }
 0x87e   : >> { %v1174_v57 = vpop.xlane.xlu0 %1173  ;;  %v1270_v60 = vpop.permute.xlu1 %1269 }
 0x87f   : >> { %2426 = vrcp.f32 %v1174_v57  ;;  %v1280_v18 = vsel %vm714_vm12, %v1270_v60, 0 }
 0x882   : >> { %v1194_v59 = vpop.permute.xlu0 %1193  ;;  %v1272_v20 = vpop.permute.xlu1 %1271 }
 0x883   : >> { %2202 = vmatprep.subr.bf16.mxu0 %v1194_v59  ;;  %v1283_v21 = vsel %vm714_vm12, %v1272_v20, 0 }
 0x884   : >> { %2203 = vmatpush3.bf16.msra.mxu0 %v1194_v59 }
 0x885   : >> { %2266 = vmatprep.subr.msk.bf16.mxu0 %vm714_vm12, %v1270_v60  ;;  %v2421_v61 = vpop.eup %2420 }
 0x886   : >> { %v2423_v62 = vpop.eup %2422  ;;  %v1188_v6 = vmul.f32 %v2421_v61, %v2417_v45  ;;  %v1266_v19 = vpop.permute.xlu0 %1265 }
 0x887   : >> { %v2425_v63 = vpop.eup %2424  ;;  %v1185_v7 = vmul.f32 %v2423_v62, %v2415_v44  ;;  %v1268_v22 = vpop.permute.xlu1 %1267 }
 0x888   : >> { %v1187_v15 = vmul.f32 %v2425_v63, %v2413_v42 }
 0x889   : >> { %v2427_v0 = vpop.eup %2426 }
 0x88a   : >> { %v1186_v8 = vmul.f32 %v2427_v0, %v2419_v48  ;;  %v1190_v17 = vpack.c.bf16 %v1188_v6, %v1187_v15 }
 0x88c   : >> { %v1189_v16 = vpack.c.bf16 %v1186_v8, %v1185_v7 }
 0x88e   : >> { %2204 = vmatprep.mubr.msk.bf16.mxu0 %vm646_vm11, %v1189_v16 }
 0x88f   : >> { %2205 = vmatmul.mubr.msk.bf16.vlgmr.msra.gmra.mrb[16].mxu0 %vm646_vm11, %v1190_v17 }
 0x890   : >> { %2209 = vmatpush3.bf16.xpose.msra.mxu0 %v1280_v18  ;;  %2212 = vmatprep.mubr.msk.bf16.mxu0 %vm714_vm12, %v1266_v19 }
 0x891   : >> { %2267 = vmatprep.subr.msk.bf16.mxu0 %vm714_vm12, %v1272_v20 }
 0x898   : >> { %2211 = vmatpush3.bf16.xpose.msra.mxu0 %v1283_v21 }
 0x89f   : >> { %2213 = vmatmul.mubr.msk.bf16.vlgmr.msra.gmra.mrb[20].mxu0 %vm714_vm12, %v1268_v22 }
 0x962   : >> { %v2206_v23 = vpop.f32.mrb[16].mxu0 }
 0x963   : >> { %v1237_v24 = vpop.f32.mrb[17].mxu0 }
 0x964   : >> { %v2207_v25 = vpop.f32.mrb[18].mxu0 }
 0x965   : >> { %v1253_v26 = vpack.c.bf16 %v2207_v25, %v2206_v23  ;;  %v1240_v27 = vpop.f32.mrb[19].mxu0  ;;  %v2368_v23 = vld [vmem:[%s3117_s5] sm:$0xff]  }
 0x966   : >> { %v1252_v28 = vpack.c.bf16 %v1240_v27, %v1237_v24  ;;  %v2369_v24 = vld [vmem:[%s3117_s5 + $0x8] sm:$0xff]  }
 0x972   : >> { %v2214_v29 = vpop.f32.mrb[20].mxu0 }
 0x973   : >> { %v1319_v30 = vpop.f32.mrb[21].mxu0  ;;  %v1328_v36 = vadd.f32 %v2214_v29, %v2819_v55 }
 0x974   : >> { %v1320_v31 = vadd.f32 %v1319_v30, %v2822_v56  ;;  %v2215_v32 = vpop.f32.mrb[22].mxu0 }
 0x975   : >> { %v1322_v34 = vpop.f32.mrb[23].mxu0  ;;  %v1331_v40 = vadd.f32 %v2215_v32, %v2831_v1  ;;  %v1340_v41 = vsel %vm646_vm11, %v1328_v36, -inf }
 0x976   : >> { %v1323_v37 = vadd.f32 %v1322_v34, %v2825_v58  ;;  %v1334_v38 = vsel %vm646_vm11, %v1320_v31, -inf }
 0x977   : >> { %1335 = vmax.xlane.f32.xlu0 %v1334_v38  ;;  %v1343_v42 = vsel %vm646_vm11, %v1331_v40, -inf }
 0x978   : >> { %v1337_v39 = vsel %vm646_vm11, %v1323_v37, -inf }
 0x979   : >> { %1338 = vmax.xlane.f32.xlu1 %v1337_v39 }
 0x97b   : >> { %1341 = vmax.xlane.f32.xlu0 %v1340_v41 }
 0x97f   : >> { %1344 = vmax.xlane.f32.xlu0 %v1343_v42 }
 0xa04   : >> { %v1336_v56 = vpop.xlane.xlu0 %1335 }
 0xa05   : >> { %v1346_v43 = vsub.f32 %v1320_v31, %v1336_v56 }
 0xa06   : >> { %v1339_v44 = vpop.xlane.xlu1 %1338 }
 0xa07   : >> { %v1350_v58 = vmul.f32 1.442695, %v1346_v43  ;;  %v1347_v46 = vsub.f32 %v1323_v37, %v1339_v44  ;;  %v2067_v37 = vld [vmem:[%s3118_s6] ss:$0 sm:$0xff] }
 0xa08   : >> { %v1342_v55 = vpop.xlane.xlu0 %1341 }
 0xa09   : >> { %v1348_v45 = vsub.f32 %v1328_v36, %v1342_v55  ;;  %v1352_v52 = vmul.f32 1.442695, %v1347_v46 }
 0xa0b   : >> { %v1354_v47 = vmul.f32 1.442695, %v1348_v45 }
 0xa0c   : >> { %v1345_v48 = vpop.xlane.xlu0 %1344 }
 0xa0d   : >> { %2428 = vpow2.f32 %v1354_v47  ;;  %v1349_v51 = vsub.f32 %v1331_v40, %v1345_v48 }
 0xa0e   : >> { %2430 = vpow2.f32 %v1350_v58 }
 0xa0f   : >> { %v1356_v1 = vmul.f32 1.442695, %v1349_v51 }
 0xa11   : >> { %2432 = vpow2.f32 %v1356_v1 }
 0xa12   : >> { %2434 = vpow2.f32 %v1352_v52 }
 0xa17   : >> { %v2429_v53 = vpop.eup %2428 }
 0xa18   : >> { %v1364_v54 = vsel %vm646_vm11, %v2429_v53, 0.0  ;;  %v2431_v57 = vpop.eup %2430 }
 0xa19   : >> { %1365 = vadd.xlane.f32.xlu1 %v1364_v54  ;;  %v1358_v60 = vsel %vm646_vm11, %v2431_v57, 0.0 }
 0xa1b   : >> { %v2433_v59 = vpop.eup %2432 }
 0xa1c   : >> { %v1367_v61 = vsel %vm646_vm11, %v2433_v59, 0.0  ;;  %v2435_v62 = vpop.eup %2434 }
 0xa1d   : >> { %1359 = vadd.xlane.f32.xlu1 %v1358_v60  ;;  %1368 = vadd.xlane.f32.xlu0 %v1367_v61  ;;  %v1361_v63 = vsel %vm646_vm11, %v2435_v62, 0.0 }
 0xa21   : >> { %1362 = vadd.xlane.f32.xlu0 %v1361_v63 }
 0xa2e   : >> { %1380 = vrot.lane.b32.xlu1 %v2806_v50, %s2583_s16 }
 0xa32   : >> { %1067 = vrot.lane.b32.xlu1 %v1063_v14, %s2584_s23 }
 0xa36   : >> { %1069 = vrot.lane.b32.xlu1 %v1064_v12, %s2584_s23  ;;  %s2586_s23 = smov 24  }
 0xa37   : >> { %1382 = vrot.lane.b32.xlu0 %v2804_v49, %s2583_s16  ;;  %s3147_s16 = sand.u32 (%p613_p11), 1, %s2542_s19  }
 0xa3a   : >> { %1258 = vrot.lane.b32.xlu1 %v1253_v26, %s2585_s25 }
 0xa3b   : >> { %1256 = vrot.lane.b32.xlu0 %v1252_v28, %s2585_s25  ;;  %s2468_s25 = scalar_lea.vmem (%p613_p11), %s3067_s27, 512 }
 0xa3c   : > { %p2469_p12 = scmp.ne.s32.totalorder (%p613_p11), %s3067_s27, %s2468_s25  ;;  %p2476_p2 = scmp.lt.s32.totalorder (%p613_p11), %s2474_s24, %s2468_s25 }
 0xa3e   : > { %p2470_p13 = pnand (%p613_p11), %p2469_p12, %p2708_p5  ;;  %p2477_p3 = por (%p613_p11), %p2476_p2, %p2475_p1 }
 0xa40   : > { %p2471_p0 = pneg (%p613_p11), %p2470_p13 }
 0xa42   : > { %p2478_p4 = pnand (%p613_p11), %p2477_p3, %p2471_p0 }
 0xaa6   : >> { %v1366_v0 = vpop.xlane.xlu1 %1365 }
 0xaaa   : >> { %v1360_v6 = vpop.xlane.xlu1 %1359  ;;  %v1369_v7 = vpop.xlane.xlu0 %1368 }
 0xaab   : >> { %2436 = vrcp.f32 %v1369_v7 }
 0xaac   : >> { %2438 = vrcp.f32 %v1360_v6 }
 0xaad   : >> { %2440 = vrcp.f32 %v1366_v0 }
 0xaae   : >> { %v1381_v50 = vpop.permute.xlu1 %1380  ;;  %v1363_v8 = vpop.xlane.xlu0 %1362 }
 0xaaf   : >> { %2442 = vrcp.f32 %v1363_v8  ;;  %2216 = vmatprep.subr.bf16.mxu1 %v1381_v50 }
 0xab0   : >> { %2217 = vmatpush3.bf16.msra.mxu1 %v1381_v50 }
 0xab2   : >> { %v1068_v10 = vpop.permute.xlu1 %1067  ;;  %v1383_v9 = vpop.permute.xlu0 %1382 }
 0xab3   : >> { %1074 = vst.msk [vmem:[#allocation2] sm:$0xff] %vm1073_vm13, %v1068_v10  ;;  %2218 = vmatprep.subr.bf16.mxu1 %v1383_v9 }
 0xab4   : >> { %2219 = vmatpush3.bf16.msra.mxu1 %v1383_v9 }
 0xab5   : >> { %v2437_v49 = vpop.eup %2436  ;;  %2224 = vmatprep.subr.bf16.mxu1 %v2368_v23 }
 0xab6   : >> { %v1070_v11 = vpop.permute.xlu1 %1069  ;;  %v1257_v12 = vpop.permute.xlu0 %1256  ;;  %v1377_v16 = vmul.f32 %v2437_v49, %v2433_v59  ;;  %v2370_v49 = vld [vmem:[%s3119_s7] sm:$0xff]  }
 0xab7   : >> { %v2439_v13 = vpop.eup %2438  ;;  %1075 = vst.msk [vmem:[#allocation2 + $0x8] sm:$0xff] %vm1073_vm13, %v1070_v11  ;;  %2232 = vmatprep.subr.bf16.mxu0 %v2370_v49  ;;  %v2371_v11 = vld [vmem:[%s3119_s7 + $0x8] sm:$0xff]  }
 0xab8   : >> { %1263 = vst.msk [vmem:[#allocation2] sm:$0xff] %vm1262_vm14, %v1257_v12  ;;  %v2441_v14 = vpop.eup %2440  ;;  %v1374_v18 = vmul.f32 %v2439_v13, %v2431_v57  ;;  %2233 = vmatpush3.bf16.msra.mxu0 %v2370_v49  ;;  %v2372_v12 = vld [vmem:[%s3121_s9] sm:$0xff]   ;;  %v2373_v13 = vld [vmem:[%s3121_s9 + $0x8] sm:$0xff]  }
 0xab9   : >> { %v2443_v15 = vpop.eup %2442  ;;  %v1376_v20 = vmul.f32 %v2441_v14, %v2429_v53  ;;  %2234 = vmatprep.subr.bf16.mxu0 %v2371_v11 }
 0xaba   : >> { %v1259_v17 = vpop.permute.xlu1 %1258  ;;  %v1375_v19 = vmul.f32 %v2443_v15, %v2435_v62 }
 0xabb   : >> { %1264 = vst.msk [vmem:[#allocation2 + $0x8] sm:$0xff] %vm1262_vm14, %v1259_v17  ;;  %v1379_v22 = vpack.c.bf16 %v1377_v16, %v1376_v20 }
 0xabc   : >> { %v1378_v21 = vpack.c.bf16 %v1375_v19, %v1374_v18  ;;  %2235 = vmatpush3.bf16.msra.mxu0 %v2371_v11 }
 0xabe   : >> { %2220 = vmatprep.mubr.msk.bf16.mxu1 %vm646_vm11, %v1378_v21 }
 0xabf   : >> { %2221 = vmatmul.mubr.msk.bf16.vlgmr.msra.gmra.mrb[8].mxu1 %vm646_vm11, %v1379_v22 }
 0xac0   : >> { %2225 = vmatpush3.bf16.msra.mxu1 %v2368_v23 }
 0xac1   : >> { %2226 = vmatprep.subr.bf16.mxu1 %v2369_v24 }
 0xac4   : >> { %2227 = vmatpush3.bf16.msra.mxu1 %v2369_v24 }
 0xac5   : >> { %2240 = vmatprep.subr.bf16.mxu1 %v2372_v12 }
 0xb92   : >> { %v2222_v25 = vpop.f32.mrb[8].mxu1 }
 0xb93   : >> { %v1426_v26 = vpop.f32.mrb[9].mxu1 }
 0xb94   : >> { %v2223_v27 = vpop.f32.mrb[10].mxu1 }
 0xb95   : >> { %v1442_v28 = vpack.c.bf16 %v2223_v27, %v2222_v25  ;;  %v1429_v29 = vpop.f32.mrb[11].mxu1  ;;  %v2072_v27 = vld [vmem:[%s3123_s11] ss:$0 sm:$0xff] }
 0xb96   : >> { %v1441_v30 = vpack.c.bf16 %v1429_v29, %v1426_v26 }
 0xb97   : >> { %1447 = vrot.lane.b32.xlu1 %v1442_v28, %s2586_s23 }
 0xb98   : >> { %1445 = vrot.lane.b32.xlu0 %v1441_v30, %s2586_s23  ;;  %s3071_s23 = scalar_lea.sflag (%p613_p11), [#allocation4], %s3147_s16 }
 0xc09   : >> { %v1448_v31 = vpop.permute.xlu1 %1447 }
 0xc0a   : >> { %1453 = vst.msk [vmem:[#allocation2 + $0x8] sm:$0xff] %vm1451_vm15, %v1448_v31  ;;  %v1446_v32 = vpop.permute.xlu0 %1445 }
 0xc0b   : >> { %1452 = vst.msk [vmem:[#allocation2] sm:$0xff] %vm1451_vm15, %v1446_v32 }
 0xc11   : >> { %v1455_v36 = vld [vmem:[#allocation2 + $0x8] sm:$0xff] }
 0xc12   : >> { %v1454_v34 = vld [vmem:[#allocation2] sm:$0xff] }
 0xc13   : >> { %2228 = vmatprep.mubr.msk.bf16.mxu1 %vm646_vm11, %v1454_v34  ;;  %v2073_v34 = vld [vmem:[%s3124_s12] ss:$0 sm:$0xff] }
 0xc14   : >> { %2229 = vmatmul.mubr.msk.bf16.vlgmr.msra.gmra.mrb[12].mxu1 %vm646_vm11, %v1455_v36 }
 0xc15   : >> { %2241 = vmatpush3.bf16.msra.mxu1 %v2372_v12 }
 0xc16   : >> { %2242 = vmatprep.subr.bf16.mxu1 %v2373_v13 }
 0xc19   : >> { %2243 = vmatpush3.bf16.msra.mxu1 %v2373_v13 }
 0xce7   : >> { %v2230_v38 = vpop.f32.mrb[12].mxu1 }
 0xce8   : >> { %v1519_v39 = vpop.f32.mrb[13].mxu1  ;;  %v1528_v40 = vadd.f32 %v2230_v38, %v2067_v37 }
 0xce9   : >> { %v1520_v41 = vadd.f32 %v2067_v37, %v1519_v39  ;;  %v2231_v42 = vpop.f32.mrb[14].mxu1 }
 0xcea   : >> { %v1522_v56 = vpop.f32.mrb[15].mxu1  ;;  %v1531_v55 = vadd.f32 %v2231_v42, %v2067_v37  ;;  %v1536_v46 = vadd.f32 %v2558_v4, %v1528_v40 }
 0xceb   : >> { %v1523_v43 = vadd.f32 %v2067_v37, %v1522_v56  ;;  %v1534_v44 = vadd.f32 %v2566_v2, %v1520_v41 }
 0xcec   : >> { %v1546_v48 = vsel %vm646_vm11, %v1536_v46, 0.0  ;;  %v1537_v51 = vadd.f32 %v2554_v5, %v1531_v55 }
 0xced   : >> { %v1540_v45 = vsel %vm646_vm11, %v1534_v44, 0.0  ;;  %v1535_v58 = vadd.f32 %v2562_v3, %v1523_v43 }
 0xcee   : >> { %1541 = vadd.xlane.f32.xlu0 %v1540_v45  ;;  %v1549_v52 = vsel %vm646_vm11, %v1537_v51, 0.0 }
 0xcef   : >> { %v1543_v47 = vsel %vm646_vm11, %v1535_v58, 0.0 }
 0xcf0   : >> { %1544 = vadd.xlane.f32.xlu1 %v1543_v47  ;;  %v2376_v47 = vld [vmem:[%s3121_s9 + $0x20] sm:$0xff]  }
 0xcf2   : >> { %1547 = vadd.xlane.f32.xlu0 %v1546_v48  ;;  %v2377_v48 = vld [vmem:[%s3121_s9 + $0x28] sm:$0xff]  }
 0xcf6   : >> { %1550 = vadd.xlane.f32.xlu0 %v1549_v52  ;;  %v2379_v52 = vld [vmem:[%s3121_s9 + $0x38] sm:$0xff]  }
 0xd7b   : >> { %v1542_v2 = vpop.xlane.xlu0 %1541 }
 0xd7c   : >> { %v1553_v1 = vmul.f32 0.03125, %v1542_v2  ;;  %v2075_v2 = vld [vmem:[%s3120_s8] ss:$0 sm:$0xff] }
 0xd7d   : >> { %v1545_v53 = vpop.xlane.xlu1 %1544 }
 0xd7e   : >> { %v1557_v54 = vsub.f32 %v1534_v44, %v1553_v1  ;;  %v1554_v57 = vmul.f32 0.03125, %v1545_v53 }
 0xd7f   : >> { %v1548_v3 = vpop.xlane.xlu0 %1547 }
 0xd80   : >> { %v1558_v59 = vsub.f32 %v1535_v58, %v1554_v57  ;;  %v1555_v4 = vmul.f32 0.03125, %v1548_v3  ;;  %v1561_v60 = vmul.f32 %v1557_v54, %v1557_v54  ;;  %v2374_v58 = vld [vmem:[%s3121_s9 + $0x10] sm:$0xff]  }
 0xd81   : >> { %2244 = vmatprep.subr.bf16.mxu1 %v2374_v58 }
 0xd82   : >> { %v1559_v61 = vsub.f32 %v1536_v46, %v1555_v4  ;;  %v1565_v62 = vsel %vm646_vm11, %v1561_v60, 0.0  ;;  %v1562_v63 = vmul.f32 %v1558_v59, %v1558_v59  ;;  %2245 = vmatpush3.bf16.msra.mxu1 %v2374_v58  ;;  %v2375_v46 = vld [vmem:[%s3121_s9 + $0x18] sm:$0xff]  }
 0xd83   : >> { %1566 = vadd.xlane.f32.xlu1 %v1565_v62  ;;  %v1551_v0 = vpop.xlane.xlu0 %1550  ;;  %2246 = vmatprep.subr.bf16.mxu1 %v2375_v46 }
 0xd84   : >> { %v1556_v5 = vmul.f32 0.03125, %v1551_v0  ;;  %v1568_v6 = vsel %vm646_vm11, %v1562_v63, 0.0  ;;  %v1563_v7 = vmul.f32 %v1559_v61, %v1559_v61 }
 0xd85   : >> { %1569 = vadd.xlane.f32.xlu0 %v1568_v6 }
 0xd86   : >> { %v1560_v50 = vsub.f32 %v1537_v51, %v1556_v5  ;;  %v1571_v8 = vsel %vm646_vm11, %v1563_v7, 0.0  ;;  %2247 = vmatpush3.bf16.msra.mxu1 %v2375_v46  ;;  %v2378_v51 = vld [vmem:[%s3121_s9 + $0x30] sm:$0xff]  }
 0xd87   : >> { %1572 = vadd.xlane.f32.xlu1 %v1571_v8  ;;  %2248 = vmatprep.subr.bf16.mxu1 %v2376_v47 }
 0xd88   : >> { %v1564_v10 = vmul.f32 %v1560_v50, %v1560_v50 }
 0xd8a   : >> { %v1574_v9 = vsel %vm646_vm11, %v1564_v10, 0.0  ;;  %2249 = vmatpush3.bf16.msra.mxu1 %v2376_v47 }
 0xd8b   : >> { %1575 = vadd.xlane.f32.xlu0 %v1574_v9  ;;  %2250 = vmatprep.subr.bf16.mxu1 %v2377_v48 }
 0xd8e   : >> { %2251 = vmatpush3.bf16.msra.mxu1 %v2377_v48 }
 0xd8f   : >> { %2252 = vmatprep.subr.bf16.mxu1 %v2378_v51 }
 0xd92   : >> { %2253 = vmatpush3.bf16.msra.mxu1 %v2378_v51 }
 0xd93   : >> { %2254 = vmatprep.subr.bf16.mxu1 %v2379_v52 }
 0xd96   : >> { %2255 = vmatpush3.bf16.msra.mxu1 %v2379_v52 }
 0xe10   : >> { %v1567_v14 = vpop.xlane.xlu1 %1566 }
 0xe11   : >> { %v1577_v15 = vmul.f32 0.03125, %v1567_v14 }
 0xe12   : >> { %v1570_v16 = vpop.xlane.xlu0 %1569 }
 0xe13   : >> { %v1581_v17 = vadd.f32 1e-05, %v1577_v15  ;;  %v1578_v18 = vmul.f32 0.03125, %v1570_v16 }
 0xe14   : >> { %v1573_v19 = vpop.xlane.xlu1 %1572 }
 0xe15   : >> { %2444 = vrsqrt.f32 %v1581_v17  ;;  %v1582_v20 = vadd.f32 1e-05, %v1578_v18  ;;  %v1579_v21 = vmul.f32 0.03125, %v1573_v19 }
 0xe17   : >> { %2446 = vrsqrt.f32 %v1582_v20  ;;  %v1583_v22 = vadd.f32 1e-05, %v1579_v21  ;;  %v2074_v21 = vld [vmem:[%s3122_s10] ss:$0 sm:$0xff] }
 0xe18   : >> { %v1576_v23 = vpop.xlane.xlu0 %1575 }
 0xe19   : >> { %2448 = vrsqrt.f32 %v1583_v22  ;;  %v1580_v24 = vmul.f32 0.03125, %v1576_v23 }
 0xe1b   : >> { %v1584_v25 = vadd.f32 1e-05, %v1580_v24 }
 0xe1d   : >> { %2450 = vrsqrt.f32 %v1584_v25 }
 0xe1f   : >> { %v2445_v26 = vpop.eup %2444 }
 0xe20   : >> { %v1589_v28 = vmul.f32 %v2445_v26, %v1557_v54 }
 0xe21   : >> { %v2447_v29 = vpop.eup %2446 }
 0xe22   : >> { %v1590_v30 = vmul.f32 %v2447_v29, %v1558_v59  ;;  %v1599_v31 = vmul.f32 %v2072_v27, %v1589_v28 }
 0xe23   : >> { %v2449_v32 = vpop.eup %2448 }
 0xe24   : >> { %v1591_v36 = vmul.f32 %v2449_v32, %v1559_v61  ;;  %v1600_v37 = vmul.f32 %v2072_v27, %v1590_v30  ;;  %v2989_v38 = vadd.f32 %v2073_v34, %v1599_v31 }
 0xe26   : >> { %v2991_v39 = vadd.f32 %v2073_v34, %v1600_v37  ;;  %v1601_v41 = vmul.f32 %v2072_v27, %v1591_v36  ;;  %v1622_v24 = vadd.f32 %v2074_v21, %v2989_v38 }
 0xe27   : >> { %v2451_v40 = vpop.eup %2450 }
 0xe28   : >> { %v1592_v42 = vmul.f32 %v2451_v40, %v1560_v50  ;;  %v1613_v56 = vpack.c.bf16 %v2991_v39, %v2989_v38  ;;  %v1611_v44 = vadd.f32 %v2073_v34, %v1601_v41  ;;  %v1623_v30 = vadd.f32 %v2074_v21, %v2991_v39 }
 0xe2a   : >> { %v1602_v43 = vmul.f32 %v2072_v27, %v1592_v42  ;;  %2236 = vmatprep.mubr.msk.bf16.mxu0 %vm646_vm11, %v1613_v56  ;;  %v1624_v22 = vadd.f32 %v2074_v21, %v1611_v44 }
 0xe2c   : >> { %v2996_v55 = vadd.f32 %v2073_v34, %v1602_v43 }
 0xe2e   : >> { %v1614_v45 = vpack.c.bf16 %v2996_v55, %v1611_v44  ;;  %v1625_v27 = vadd.f32 %v2074_v21, %v2996_v55 }
 0xe30   : >> { %2237 = vmatmul.mubr.msk.bf16.vlgmr.msra.gmra.mrb[24].mxu0 %vm646_vm11, %v1614_v45 }
 0xf03   : >> { %v2238_v1 = vpop.f32.mrb[24].mxu0 }
 0xf04   : >> { %v1698_v53 = vadd.f32 %v2238_v1, %v2075_v2  ;;  %v1689_v54 = vpop.f32.mrb[25].mxu0 }
 0xf05   : >> { %v1690_v57 = vadd.f32 %v2075_v2, %v1689_v54  ;;  %v2239_v3 = vpop.f32.mrb[26].mxu0 }
 0xf06   : >> { %v1710_v59 = vmul.f32 0.70710677, %v1698_v53  ;;  %v1701_v4 = vadd.f32 %v2239_v3, %v2075_v2  ;;  %v1692_v60 = vpop.f32.mrb[27].mxu0  ;;  %v1706_v9 = vmul.f32 0.5, %v1698_v53 }
 0xf07   : >> { %v1708_v61 = vmul.f32 0.70710677, %v1690_v57  ;;  %v1693_v62 = vadd.f32 %v2075_v2, %v1692_v60  ;;  %v1704_v12 = vmul.f32 0.5, %v1690_v57 }
 0xf08   : >> { %2452 = verf.f32 %v1710_v59  ;;  %v1711_v63 = vmul.f32 0.70710677, %v1701_v4  ;;  %v1707_v49 = vmul.f32 0.5, %v1701_v4 }
 0xf09   : >> { %2454 = verf.f32 %v1708_v61  ;;  %v1709_v0 = vmul.f32 0.70710677, %v1693_v62  ;;  %v1705_v13 = vmul.f32 0.5, %v1693_v62 }
 0xf0a   : >> { %2456 = verf.f32 %v1711_v63 }
 0xf0b   : >> { %2458 = verf.f32 %v1709_v0 }
 0xf12   : >> { %v2453_v5 = vpop.eup %2452 }
 0xf13   : >> { %v2455_v6 = vpop.eup %2454  ;;  %v1718_v7 = vadd.f32 1.0, %v2453_v5 }
 0xf14   : >> { %v2457_v50 = vpop.eup %2456  ;;  %v1716_v8 = vadd.f32 1.0, %v2455_v6 }
 0xf15   : >> { %v2459_v10 = vpop.eup %2458  ;;  %v1719_v11 = vadd.f32 1.0, %v2457_v50  ;;  %v1722_v15 = vmul.f32 %v1718_v7, %v1706_v9  ;;  %v2088_v9 = vld [vmem:[%s3125_s13] ss:$0 sm:$0xff] }
 0xf16   : >> { %v1717_v14 = vadd.f32 1.0, %v2459_v10  ;;  %v1720_v17 = vmul.f32 %v1716_v8, %v1704_v12  ;;  %v2089_v12 = vld [vmem:[%s3126_s14] ss:$0 sm:$0xff] }
 0xf17   : >> { %v1723_v16 = vmul.f32 %v1719_v11, %v1707_v49 }
 0xf18   : >> { %v1721_v18 = vmul.f32 %v1717_v14, %v1705_v13 }
 0xf19   : >> { %v1725_v19 = vpack.c.bf16 %v1723_v16, %v1722_v15 }
 0xf1a   : >> { %v1724_v20 = vpack.c.bf16 %v1721_v18, %v1720_v17 }
 0xf1c   : >> { %2256 = vmatprep.mubr.bf16.mxu1 %v1724_v20 }
 0xf1d   : >> { %2257 = vmatmul.mubr.bf16.vlgmr.msra.gmra.mrb[16].mxu1 %v1725_v19 }
 0xff0   : >> { %v2258_v23 = vpop.f32.mrb[16].mxu1 }
 0xff1   : >> { %v1841_v25 = vadd.f32 %v2258_v23, %v1624_v22  ;;  %v1824_v26 = vpop.f32.mrb[17].mxu1 }
 0xff2   : >> { %v1839_v28 = vadd.f32 %v1824_v26, %v1622_v24  ;;  %v2259_v29 = vpop.f32.mrb[18].mxu1 }
 0xff3   : >> { %v1842_v31 = vadd.f32 %v2259_v29, %v1625_v27  ;;  %v1827_v32 = vpop.f32.mrb[19].mxu1  ;;  %v1851_v40 = vsel %vm646_vm11, %v1841_v25, 0.0 }
 0xff4   : >> { %v1840_v34 = vadd.f32 %v1827_v32, %v1623_v30  ;;  %v1845_v36 = vsel %vm646_vm11, %v1839_v28, 0.0 }
 0xff5   : >> { %1846 = vadd.xlane.f32.xlu1 %v1845_v36  ;;  %v1854_v38 = vsel %vm646_vm11, %v1842_v31, 0.0 }
 0xff6   : >> { %v1848_v37 = vsel %vm646_vm11, %v1840_v34, 0.0 }
 0xff7   : >> { %1849 = vadd.xlane.f32.xlu0 %v1848_v37 }
 0xff9   : >> { %1852 = vadd.xlane.f32.xlu1 %v1851_v40 }
 0xffb   : >> { %1855 = vadd.xlane.f32.xlu0 %v1854_v38 }
0x1082   : >> { %v1847_v41 = vpop.xlane.xlu1 %1846 }
0x1083   : >> { %v1857_v42 = vmul.f32 0.03125, %v1847_v41 }
0x1084   : >> { %v1850_v56 = vpop.xlane.xlu0 %1849 }
0x1085   : >> { %v1861_v43 = vsub.f32 %v1839_v28, %v1857_v42  ;;  %v1858_v39 = vmul.f32 0.03125, %v1850_v56 }
0x1086   : >> { %v1853_v44 = vpop.xlane.xlu1 %1852 }
0x1087   : >> { %v1862_v55 = vsub.f32 %v1840_v34, %v1858_v39  ;;  %v1859_v45 = vmul.f32 0.03125, %v1853_v44  ;;  %v1865_v58 = vmul.f32 %v1861_v43, %v1861_v43 }
0x1088   : >> { %v1856_v46 = vpop.xlane.xlu0 %1855 }
0x1089   : >> { %v1863_v47 = vsub.f32 %v1841_v25, %v1859_v45  ;;  %v1860_v48 = vmul.f32 0.03125, %v1856_v46  ;;  %v1869_v51 = vsel %vm646_vm11, %v1865_v58, 0.0  ;;  %v1866_v52 = vmul.f32 %v1862_v55, %v1862_v55 }
0x108a   : >> { %1870 = vadd.xlane.f32.xlu1 %v1869_v51 }
0x108b   : >> { %v1864_v2 = vsub.f32 %v1842_v31, %v1860_v48  ;;  %v1872_v1 = vsel %vm646_vm11, %v1866_v52, 0.0  ;;  %v1867_v53 = vmul.f32 %v1863_v47, %v1863_v47 }
0x108c   : >> { %1873 = vadd.xlane.f32.xlu0 %v1872_v1 }
0x108d   : >> { %v1875_v54 = vsel %vm646_vm11, %v1867_v53, 0.0  ;;  %v1868_v57 = vmul.f32 %v1864_v2, %v1864_v2 }
0x108e   : >> { %1876 = vadd.xlane.f32.xlu1 %v1875_v54 }
0x108f   : >> { %v1878_v3 = vsel %vm646_vm11, %v1868_v57, 0.0 }
0x1090   : >> { %1879 = vadd.xlane.f32.xlu0 %v1878_v3 }
0x1117   : >> { %v1871_v59 = vpop.xlane.xlu1 %1870 }
0x1118   : >> { %v1881_v4 = vmul.f32 0.03125, %v1871_v59 }
0x1119   : >> { %v1874_v60 = vpop.xlane.xlu0 %1873 }
0x111a   : >> { %v1885_v61 = vadd.f32 1e-05, %v1881_v4  ;;  %v1882_v62 = vmul.f32 0.03125, %v1874_v60 }
0x111b   : >> { %v1877_v63 = vpop.xlane.xlu1 %1876 }
0x111c   : >> { %2460 = vrsqrt.f32 %v1885_v61  ;;  %v1886_v0 = vadd.f32 1e-05, %v1882_v62  ;;  %v1883_v5 = vmul.f32 0.03125, %v1877_v63 }
0x111d   : >> { %v1880_v6 = vpop.xlane.xlu0 %1879 }
0x111e   : >> { %2462 = vrsqrt.f32 %v1886_v0  ;;  %v1887_v7 = vadd.f32 1e-05, %v1883_v5  ;;  %v1884_v50 = vmul.f32 0.03125, %v1880_v6 }
0x1120   : >> { %2464 = vrsqrt.f32 %v1887_v7  ;;  %v1888_v8 = vadd.f32 1e-05, %v1884_v50 }
0x1122   : >> { %2466 = vrsqrt.f32 %v1888_v8 }
0x1126   : >> { %v2461_v10 = vpop.eup %2460 }
0x1127   : >> { %v1893_v49 = vmul.f32 %v2461_v10, %v1861_v43 }
0x1128   : >> { %v2463_v11 = vpop.eup %2462 }
0x1129   : >> { %v1903_v13 = vmul.f32 %v2088_v9, %v1893_v49  ;;  %v1894_v14 = vmul.f32 %v2463_v11, %v1862_v55 }
0x112a   : >> { %v2465_v15 = vpop.eup %2464 }
0x112b   : >> { %v1913_v16 = vadd.f32 %v2089_v12, %v1903_v13   ;;  %v1904_v17 = vmul.f32 %v2088_v9, %v1894_v14  ;;  %v1895_v18 = vmul.f32 %v2465_v15, %v1863_v47 }
0x112c   : >> { %v2467_v19 = vpop.eup %2466 }
0x112d   : >> { %v1914_v20 = vadd.f32 %v2089_v12, %v1904_v17   ;;  %v1905_v21 = vmul.f32 %v2088_v9, %v1895_v18  ;;  %v1896_v22 = vmul.f32 %v2467_v19, %v1864_v2  ;;  %v3146_v2 = vmov %v1913_v16  ;;  %615 = sbr.rel (!%p613_p11) target bundleno = 168 (0xa8), region = 128  ;;  %1918 = vst.msk [vmem:[%s2762_s20] sm:$0xff] (%p613_p11), %vm646_vm11, %v1913_v16 }
0x112f   : >> { %v1915_v23 = vadd.f32 %v2089_v12, %v1905_v21   ;;  %v1906_v24 = vmul.f32 %v2088_v9, %v1896_v22  ;;  %v3145_v3 = vmov %v1914_v20  ;;  %1919 = vst.msk [vmem:[%s2762_s20 + $0x8] sm:$0xff] (%p613_p11), %vm646_vm11, %v1914_v20 }
0x1131   : >> { %v1916_v25 = vadd.f32 %v2089_v12, %v1906_v24   ;;  %v3144_v4 = vmov %v1915_v23  ;;  %1920 = vst.msk [vmem:[%s2762_s20 + $0x10] sm:$0xff] (%p613_p11), %vm646_vm11, %v1915_v23 }
0x1133   : >> { %v3143_v5 = vmov %v1916_v25  ;;  %1921 = vst.msk [vmem:[%s2762_s20 + $0x18] sm:$0xff] (%p613_p11), %vm646_vm11, %v1916_v25 }
0x1134   : > { %2481 = shalt.err (!%p2478_p4)
}
0x1135   : > { %s2482_s20 = scalar_lea.hbm %s3064_s17, 512  ;;  %s2486_s16 = scalar_lea.hbm %s3127_s15, 1024 }
0x1136   : > { %p2483_p7 = scmp.ne.s32.totalorder %s3064_s17, %s2482_s20  ;;  %p2487_p10 = scmp.lt.u32.totalorder %s3064_s17, %s3127_s15 }
0x1137   : > { %p2488_p11 = scmp.lt.u32.totalorder %s2486_s16, %s2482_s20  ;;  %p2490_p13 = scmp.lt.u32.totalorder %s2482_s20, %s3064_s17 }
0x1138   : > { %p2484_p8 = pnand %p2483_p7, %p2708_p5 }
0x1139   : > { %p2489_p12 = por %p2488_p11, %p2487_p10 }
0x113a   : > { %p2485_p9 = pneg %p2484_p8 }
0x113b   : > { %p2491_p0 = por %p2490_p13, %p2489_p12 }
0x113d   : > { %p2492_p1 = pnand %p2491_p0, %p2485_p9 }
0x113f   : > { %2495 = shalt.err (!%p2492_p1)
}
0x1140   : > { %s2588_s25 = smov 128   ;;  %s2589_s24 = smov 8  }
0x1141   : > { %2268 = dma.vmem_to_hbm [thread:$0]  (%p2708_p5), %s3067_s27, 512, %s3064_s17, %s3071_s23, %s2588_s25, %s2588_s25, %s2589_s24  }
0x1142 PF: > { %p2274_p2 = scmp.ge.s32.totalorder %s2550_s21, 2  ;;  %s1951_s0 = sand.u32 1, %s2538_s18  }
0x1143   : > { %s1952_s20 = scalar_lea.sflag [#allocation4], %s1951_s0 }
0x1144   : > { %p2271_p3 = pnand %p2274_p2, %p2712_p6 }
0x1146   : > { %2533 = dma.done.wait (!%p2271_p3), %s1952_s20, 512  }
0x1147   : > { %2535 = vsyncadd (!%p2271_p3), %s1952_s20, 4294966784  ;;  %s3148_s21 = sld [smem:[#allocation7_spill]]  ;;  %s3149_s30 = sld [smem:[#allocation6_spill]] }
0x1148   : > { %s3150_s20 = sld [smem:[#allocation8_spill]]  ;;  %s3151_s18 = smov %s2542_s19 }
0x114d   : > { %p25_p4 = scmp.ge.s32.totalorder %s3148_s21, 4   ;;  %s3152_s19 = smov %s3149_s30 }
0x114f   :  { %27 = sbr.rel (!%p25_p4) target bundleno = 5 (0x5), region = 139 }
0x1156   :  { %1957 = vsyncpa [#allocation4], 1 }
0x1157   :  { %1959 = vsyncpa [#allocation4 + $0x1], 1 }

</bundles_post_ra>
